<compile_context>
chip_gen: v7x
topology: tpu7x:2x2x1
jax: 0.10.0
libtpu: 0.0.40
codegen_flags: <defaults>
</compile_context>

<pallas_src>
import functools

import jax
import jax.numpy as jnp
from jax.experimental import pallas as pl
from jax.experimental.pallas import tpu as pltpu

HOP_SIZE = 2

PARAM_ORDER = ("fc1_w1", "fc1_b1", "fc1_w2", "fc1_b2",
               "fc2_w1", "fc2_b1", "fc2_w2", "fc2_b2",
               "out_w1", "out_w2", "out_b")


# ---------------------------------------------------------------------------
# Kernel: hop_size x Num_Graph_Module over the (Bt, N, D) number nodes.
#   GraphConvolution(x, adj) = adj @ (x @ W) + b
#   Num_Graph_Module:  n1 = relu(GCN_greater(x)),  n2 = relu(GCN_lower(x)),
#                      x  = relu(n1 @ out_w1 + n2 @ out_w2 + out_b)
# ---------------------------------------------------------------------------
def num_gnn_kernel(num_ref, adj_ref, w1_ref, w2_ref, wo_ref,
                   b1_ref, b2_ref, bo_ref,
                   node_out_ref, num_emb_ref):
    f32, bf16 = jnp.float32, jnp.bfloat16
    Bt, N, D = num_ref.shape
    hop = w1_ref.shape[0]

    # Host-normalized D^{-1}A graphs, bf16, stacked [greater; lower] along a
    # leading axis.  Leading-dim reshape only (no lane relayout).
    adj2 = adj_ref[...].reshape(2 * Bt, N, N)                      # (2*Bt, N, N)

    def proj(x, w):
        """Dense projection with batch folded into the MXU M dimension.

        (Bt, N, K) @ (K, M) -> (Bt, N, M); bf16 operands, f32 accumulation.
        """
        bt, n, k = x.shape
        y = jnp.dot(x.reshape(bt * n, k).astype(bf16), w,
                    preferred_element_type=f32)
        return y.reshape(bt, n, y.shape[-1])

    def agg(x1, x2):
        """Graph aggregation for BOTH branches with one batched matmul.

        x1 rides the 'greater' graphs, x2 the 'lower' graphs; stacking along the
        (leading) batch axis halves the number of tiny K=N matmul dispatches.
        """
        x = jnp.concatenate([x1, x2], axis=0).astype(bf16)         # (2*Bt, N, M)
        y = jnp.einsum('bij,bjm->bim', adj2, x,
                       preferred_element_type=f32)                 # (2*Bt, N, M)
        return y[:Bt], y[Bt:]
    # TODO(synk): for production shapes, measure a VPU formulation of this
    # K=N(<16) contraction (broadcast-multiply + sublane reduce) against the MXU
    # einsum; the MXU is >97% idle on it and the push/pop path may bind first.

    node = num_ref[...]                                            # (Bt, N, D) f32
    for h in range(hop):                                           # static unroll
        # ---- GCN layer 1: separate per-branch matmuls (no lane-offset slices,
        #      no zero-MAC block-diagonal weights). ----
        p1 = proj(node, w1_ref[h, 0])                              # (Bt, N, Dh)
        p2 = proj(node, w1_ref[h, 1])
        a1, a2 = agg(p1, p2)
        h1 = jnp.maximum(a1 + b1_ref[h, 0], 0.0)
        h2 = jnp.maximum(a2 + b1_ref[h, 1], 0.0)
        # TODO(synk): F.dropout(p=0.1) between the two GCN layers is omitted
        # (deterministic / eval-mode kernel).

        # ---- GCN layer 2 ----
        q1 = proj(h1, w2_ref[h, 0])                                # (Bt, N, D)
        q2 = proj(h2, w2_ref[h, 1])
        g1, g2 = agg(q1, q2)
        n1 = jnp.maximum(g1 + b2_ref[h, 0], 0.0)
        n2 = jnp.maximum(g2 + b2_ref[h, 1], 0.0)

        # ---- node_out Linear over the concat == sum of two matmuls (avoids a
        #      lane-dim concat of n1/n2). ----
        node = jnp.maximum(proj(n1, wo_ref[h, 0]) + proj(n2, wo_ref[h, 1])
                           + bo_ref[h], 0.0)

    # Tiny (Bt, N, D) outputs; at production D (>= 128) these stores are already
    # lane-dense, and the store-bound (B, S, D) path lives outside the kernel.
    node_out_ref[...] = node
    num_emb_ref[...] = num_ref[...] + node


# ---------------------------------------------------------------------------
# Host-side graph construction & weight packing
# ---------------------------------------------------------------------------
def build_graphs(num_pos_pad, num_order_pad):
    """graph_greater / graph_lower, pre-normalized on the host (reused per hop).

    Normalization is a faithful translation of the torch code as written:
    d = graph.sum(1); diag_embed(d ** -1).bmm(graph), i.e. row i of the graph is
    scaled by 1 / (column-sum of column i).  The diagonal guarantees d >= 1.
    # TODO(synk): if mwptoolkit is ever confirmed to intend row-normalized
    # D^{-1}A, change the sum to axis=-1 here (kernel + reference share this).
    """
    B, N = num_pos_pad.shape
    node_mask = (num_order_pad > 0).astype(jnp.float32)
    order = num_order_pad
    greater = (order[:, :, None] > order[:, None, :]).astype(jnp.float32)
    lower = (order[:, :, None] <= order[:, None, :]).astype(jnp.float32)
    diag = jnp.eye(N, dtype=jnp.float32)[None]
    graph_ = node_mask[:, :, None] * node_mask[:, None, :] * (1.0 - diag)
    gg = graph_ * greater + diag
    gl = graph_ * lower + diag

    def normalize(g):
        d = jnp.maximum(jnp.sum(g, axis=1), 1e-12)
        return g / d[:, :, None]

    return normalize(gg), normalize(gl)


def prepare_weights(params, matmul_dtype=jnp.bfloat16):
    """Stack per-branch (greater / lower) weights along a small leading axis.

    No block-diagonal fc*_w2 fusion (half its MACs were zeros) and no lane-dim
    weight concats, so the kernel never lane-slices activations.  Matmul weights
    go to bf16 (halved DMA), biases stay f32.
    """
    f32 = jnp.float32
    w1 = jnp.stack([params["fc1_w1"], params["fc2_w1"]], axis=1).astype(matmul_dtype)
    w2 = jnp.stack([params["fc1_w2"], params["fc2_w2"]], axis=1).astype(matmul_dtype)
    wo = jnp.stack([params["out_w1"], params["out_w2"]], axis=1).astype(matmul_dtype)
    b1 = jnp.stack([params["fc1_b1"], params["fc2_b1"]], axis=1).astype(f32)
    b2 = jnp.stack([params["fc1_b2"], params["fc2_b2"]], axis=1).astype(f32)
    bo = params["out_b"].astype(f32)
    return w1, w2, wo, b1, b2, bo


# ---------------------------------------------------------------------------
# Launch configuration (generation-aware, computed outside of jit tracing)
# ---------------------------------------------------------------------------
@functools.lru_cache(maxsize=None)
def _vmem_budget_bytes():
    """Per-kernel VMEM budget: ~cap-40MiB on 128 MiB parts (v5e/v6e -> ~88 MiB),
    ~cap/2 on 64 MiB v7x (-> 32 MiB); conservative fallback if the query fails."""
    try:
        cap = int(pltpu.get_tpu_info().vmem_capacity_bytes)
    except Exception:                       # info query unavailable -> v7x-safe
        cap = 64 * 1024 * 1024
    return max(16 * 1024 * 1024, cap // 2, cap - 40 * 1024 * 1024)


@functools.lru_cache(maxsize=None)
def _single_buffer_weights_supported():
    """One-time feature probe for pipeline_mode=pl.Buffered(1) (single VMEM
    buffer for constant-index-map weights).  Probing a throwaway kernel keeps
    the real pallas_call free of any try/except."""
    if not hasattr(pl, "Buffered"):
        return False

    def probe_kernel(x_ref, o_ref):
        o_ref[...] = x_ref[...]

    try:
        fn = pl.pallas_call(
            probe_kernel,
            out_shape=jax.ShapeDtypeStruct((8, 128), jnp.float32),
            grid=(2,),
            in_specs=[pl.BlockSpec((8, 128), lambda i: (0, 0),
                                   pipeline_mode=pl.Buffered(1))],
            out_specs=pl.BlockSpec((8, 128), lambda i: (0, 0)),
        )
        jax.block_until_ready(fn(jnp.zeros((8, 128), jnp.float32)))
        return True
    except Exception:
        return False


def _footprint_bytes(bt, N, D, Dh, weight_bytes, weight_buffers):
    """Per-grid-step VMEM: double-buffered pipelined I/O + live f32 intermediates
    of the hop loop (review: count intermediates, not just I/O) + weights."""
    io = bt * (N * D * 4            # num_encoder_outputs block (f32)
               + 2 * N * N * 2      # packed bf16 graphs
               + 2 * N * D * 4)     # node / num_embedding output blocks (f32)
    interm = bt * (8 * N * D + 8 * N * Dh + 4 * N * N) * 4
    return 2 * io + interm + weight_buffers * weight_bytes


def _choose_bt(B, N, D, Dh, weight_bytes, weight_buffers, budget):
    # Aim for ~1024 MXU rows (Bt*N) but never force extra grid steps: on
    # single-TC v5e/v6e a split that still fits VMEM is pure per-step overhead
    # (~0.35us each) and halves the MXU M dimension.
    bt = max(1, min(B, -(-1024 // N)))
    while bt > 1 and _footprint_bytes(bt, N, D, Dh, weight_bytes,
                                      weight_buffers) > budget:
        bt = max(1, bt // 2)
    return bt


def _launch_config(enc_shape, num_shape, fc1_w1_shape):
    S, B, D = enc_shape
    N = num_shape[1]
    hop, _, Dh = fc1_w1_shape
    single_buf = bool(_single_buffer_weights_supported())
    wbuf = 1 if single_buf else 2
    weight_bytes = hop * ((2 * D * Dh + 2 * Dh * D + 2 * D * D) * 2   # bf16 mats
                          + (2 * Dh + 2 * D + D) * 4)                 # f32 biases
    budget = _vmem_budget_bytes()
    Bt = _choose_bt(B, N, D, Dh, weight_bytes, wbuf, budget)
    nb = -(-B // Bt)
    Bp = nb * Bt
    fp = _footprint_bytes(Bt, N, D, Dh, weight_bytes, wbuf)
    vmem_limit = int(min(max(fp + (8 << 20), 32 << 20), max(budget, 32 << 20)))
    return Bt, nb, Bp, vmem_limit, single_buf


# ---------------------------------------------------------------------------
# Forward pass (jitted; kernel + XLA scatter/residual/max in one program)
# ---------------------------------------------------------------------------
@functools.partial(jax.jit, static_argnums=(5,))
def _num_encoder_forward_impl(encoder_outputs, num_encoder_outputs,
                              num_pos_pad, num_order_pad, params, cfg):
    Bt, nb, Bp, vmem_limit, single_buf = cfg
    f32 = jnp.float32
    S, B, D = encoder_outputs.shape
    N = num_encoder_outputs.shape[1]

    encoder_outputs = encoder_outputs.astype(f32)
    num_f = num_encoder_outputs.astype(f32)

    # Graph construction + normalization on the host; both graphs packed into a
    # single bf16 array (one DMA, half the bytes of two f32 graphs).
    # TODO(synk): adjacency in bf16 matches torch to ~3 decimal digits; keep it
    # f32 here if bit-tighter parity with the PyTorch module is required.
    gg, gl = build_graphs(num_pos_pad, num_order_pad)
    adj = jnp.stack([gg, gl], axis=0).astype(jnp.bfloat16)          # (2, B, N, N)
    w1, w2, wo, b1, b2, bo = prepare_weights(params)

    num_p = num_f
    if Bp != B:
        num_p = jnp.pad(num_f, ((0, Bp - B), (0, 0), (0, 0)))
        adj = jnp.pad(adj, ((0, 0), (0, Bp - B), (0, 0), (0, 0)))

    wkw = dict(pipeline_mode=pl.Buffered(1)) if single_buf else {}

    def const_spec(a):
        return pl.BlockSpec(a.shape, lambda b, _nd=a.ndim: (0,) * _nd, **wkw)

    node_p, num_emb_p = pl.pallas_call(
        num_gnn_kernel,
        out_shape=(jax.ShapeDtypeStruct((Bp, N, D), f32),
                   jax.ShapeDtypeStruct((Bp, N, D), f32)),
        grid_spec=pltpu.PrefetchScalarGridSpec(
            num_scalar_prefetch=0,
            grid=(nb,),
            in_specs=[pl.BlockSpec((Bt, N, D), lambda b: (b, 0, 0)),     # nodes
                      pl.BlockSpec((2, Bt, N, N), lambda b: (0, b, 0, 0)),  # graphs
                      const_spec(w1), const_spec(w2), const_spec(wo),
                      const_spec(b1), const_spec(b2), const_spec(bo)],
            out_specs=(pl.BlockSpec((Bt, N, D), lambda b: (b, 0, 0)),
                       pl.BlockSpec((Bt, N, D), lambda b: (b, 0, 0))),
        ),
        # TODO(synk): on v7x verify both TensorCores pick up the batch axis;
        # if one TC idles, switch to pltpu.CORE_PARALLEL semantics here.
        compiler_params=pltpu.CompilerParams(
            dimension_semantics=("parallel",),
            vmem_limit_bytes=vmem_limit,
        ),
    )(num_p, adj, w1, w2, wo, b1, b2, bo)

    node = node_p[:B]
    num_embedding = num_emb_p[:B]

    # Everything touching the (S, B, D) encoder tensor stays in XLA, in the
    # module's native seq-major layout (no transposes), fused under this jit:
    # torch scatter_ (overwrite semantics) -> residual add -> sequence max.
    num_mask = num_pos_pad > -1
    clamped = jnp.where(num_mask, num_pos_pad, S).astype(jnp.int32)       # (B, N)
    batch_idx = jnp.broadcast_to(jnp.arange(B, dtype=jnp.int32)[:, None], (B, N))
    gnn_info = jnp.zeros((S + 1, B, D), f32)
    gnn_info = gnn_info.at[clamped, batch_idx, :].set(node)   # row S = dump slot
    gnn_info_vec = encoder_outputs + gnn_info[:S]
    problem_output = jnp.max(gnn_info_vec, axis=0)
    return gnn_info_vec, num_embedding, problem_output


def num_encoder_forward(encoder_outputs, num_encoder_outputs,
                        num_pos_pad, num_order_pad, params):
    cfg = _launch_config(tuple(encoder_outputs.shape),
                         tuple(num_encoder_outputs.shape),
                         tuple(params["fc1_w1"].shape))
    return _num_encoder_forward_impl(encoder_outputs, num_encoder_outputs,
                                     num_pos_pad, num_order_pad, params, cfg)


# ---------------------------------------------------------------------------
# Parameters & pure-JAX reference
# ---------------------------------------------------------------------------
def init_params(key, node_dim, hop_size=HOP_SIZE):
    D = node_dim
    Dh = D // 4
    ks = jax.random.split(key, len(PARAM_ORDER))
    shapes = dict(
        fc1_w1=(hop_size, D, Dh), fc1_b1=(hop_size, 1, Dh),
        fc1_w2=(hop_size, Dh, D), fc1_b2=(hop_size, 1, D),
        fc2_w1=(hop_size, D, Dh), fc2_b1=(hop_size, 1, Dh),
        fc2_w2=(hop_size, Dh, D), fc2_b2=(hop_size, 1, D),
        out_w1=(hop_size, D, D), out_w2=(hop_size, D, D),
        out_b=(hop_size, 1, D),
    )
    return {name: 0.1 * jax.random.normal(k, shapes[name], jnp.float32)
            for name, k in zip(PARAM_ORDER, ks)}


def reference_forward(encoder_outputs, num_encoder_outputs,
                      num_pos_pad, num_order_pad, params):
    """Pure-JAX (all-f32) mirror of the PyTorch NumEncoder forward (eval mode)."""
    S, B, D = encoder_outputs.shape
    N = num_encoder_outputs.shape[1]
    num_mask = num_pos_pad > -1
    ggn, gln = build_graphs(num_pos_pad, num_order_pad)

    def gcn(x, adj, w1, b1, w2, b2):
        h = jnp.einsum('bij,bjk->bik', adj, x @ w1) + b1
        h = jnp.maximum(h, 0.0)
        # dropout omitted (eval mode)
        return jnp.einsum('bij,bjk->bik', adj, h @ w2) + b2

    node = num_encoder_outputs.astype(jnp.float32)
    for h in range(HOP_SIZE):
        n1 = jnp.maximum(gcn(node, ggn, params['fc1_w1'][h], params['fc1_b1'][h],
                             params['fc1_w2'][h], params['fc1_b2'][h]), 0.0)
        n2 = jnp.maximum(gcn(node, gln, params['fc2_w1'][h], params['fc2_b1'][h],
                             params['fc2_w2'][h], params['fc2_b2'][h]), 0.0)
        node = jnp.maximum(n1 @ params['out_w1'][h] + n2 @ params['out_w2'][h]
                           + params['out_b'][h], 0.0)

    num_embedding = num_encoder_outputs + node
    clamped = jnp.where(num_mask, num_pos_pad, S)
    gnn_info = jnp.zeros((B, S + 1, D), jnp.float32)
    gnn_info = gnn_info.at[jnp.arange(B)[:, None], clamped].set(node)
    gnn_info = gnn_info[:, :S, :]
    gnn_info = jnp.transpose(gnn_info, (1, 0, 2)) + encoder_outputs
    problem_output = jnp.max(gnn_info, axis=0)
    return gnn_info, num_embedding, problem_output


if __name__ == "__main__":
    B, S, N, D = 2, 16, 8, 32
    key = jax.random.PRNGKey(0)
    k1, k2, k3 = jax.random.split(key, 3)

    encoder_outputs = jax.random.normal(k1, (S, B, D), jnp.float32)      # (seq, batch, hidden)
    num_encoder_outputs = jax.random.normal(k2, (B, N, D), jnp.float32)  # (batch, num, hidden)
    num_pos_pad = jnp.array([[1, 4, 7, 10, -1, -1, -1, -1],
                             [0, 3, 5, 8, 12, -1, -1, -1]], dtype=jnp.int32)
    num_order_pad = jnp.array([[2, 1, 3, 1, 0, 0, 0, 0],
                               [1, 2, 2, 3, 1, 0, 0, 0]], dtype=jnp.int32)
    params = init_params(k3, D, HOP_SIZE)

    outs = num_encoder_forward(encoder_outputs, num_encoder_outputs,
                               num_pos_pad, num_order_pad, params)
    outs = jax.block_until_ready(outs)

    refs = reference_forward(encoder_outputs, num_encoder_outputs,
                             num_pos_pad, num_order_pad, params)
    # Kernel runs its matmuls with bf16 operands (f32 accumulation), the
    # reference is all-f32 -> compare with a bf16-appropriate tolerance.
    for got, want in zip(outs, refs):
        assert got.shape == want.shape, (got.shape, want.shape)
        err = float(jnp.max(jnp.abs(got - want)))
        assert jnp.allclose(got, want, rtol=5e-2, atol=5e-2), err

    print("KERNEL_OK")
</pallas_src>

<mosaic_0001>
module attributes {stable_mosaic.version = 11 : i64} {
  func.func @probe_kernel(%arg0: i32, %arg1: memref<8x128xf32, #tpu.memory_space<vmem>>, %arg2: memref<8x128xf32, #tpu.memory_space<vmem>>) attributes {dimension_semantics = [#tpu.dimension_semantics<arbitrary>], iteration_bounds = array<i64: 2>, scalar_prefetch = 0 : i64, scratch_operands = 0 : i64, tpu.core_type = #tpu.core_type<tc>, window_params = [{pipeline_mode = #tpu.pipeline_mode<synchronous>, transform_indices = @transform_0, window_bounds = array<i64: 8, 128>}, {pipeline_mode = #tpu.pipeline_mode<synchronous>, transform_indices = @transform_1, window_bounds = array<i64: 8, 128>}]} {
    %c0 = arith.constant 0 : index
    %c0_0 = arith.constant 0 : index
    %0 = vector.load %arg1[%c0, %c0_0] : memref<8x128xf32, #tpu.memory_space<vmem>>, vector<8x128xf32>
    %c0_1 = arith.constant 0 : index
    %c0_2 = arith.constant 0 : index
    %1 = vector.load %arg2[%c0_1, %c0_2] : memref<8x128xf32, #tpu.memory_space<vmem>>, vector<8x128xf32>
    tpu.vector_store %arg2[%c0_1, %c0_2], %0 {strides = array<i32>} : memref<8x128xf32, #tpu.memory_space<vmem>>, vector<8x128xf32>,
    return
  }
  func.func @transform_0(%arg0: i32) -> (i32, i32) {
    %c0_i32 = arith.constant 0 : i32
    %c0_i32_0 = arith.constant 0 : i32
    %c0_i32_1 = arith.constant 0 : i32
    return %c0_i32, %c0_i32_0 : i32, i32
  }
  func.func @transform_1(%arg0: i32) -> (i32, i32) {
    %c0_i32 = arith.constant 0 : i32
    %c0_i32_0 = arith.constant 0 : i32
    %c0_i32_1 = arith.constant 0 : i32
    return %c0_i32, %c0_i32_0 : i32, i32
  }
}

module attributes {stable_mosaic.version = 11 : i64} {
  func.func @num_gnn_kernel(%arg0: i32, %arg1: memref<2x8x32xf32, #tpu.memory_space<vmem>>, %arg2: memref<2x2x8x8xbf16, #tpu.memory_space<vmem>>, %arg3: memref<2x2x32x8xbf16, #tpu.memory_space<vmem>>, %arg4: memref<2x2x8x32xbf16, #tpu.memory_space<vmem>>, %arg5: memref<2x2x32x32xbf16, #tpu.memory_space<vmem>>, %arg6: memref<2x2x1x8xf32, #tpu.memory_space<vmem>>, %arg7: memref<2x2x1x32xf32, #tpu.memory_space<vmem>>, %arg8: memref<2x1x32xf32, #tpu.memory_space<vmem>>, %arg9: memref<2x8x32xf32, #tpu.memory_space<vmem>>, %arg10: memref<2x8x32xf32, #tpu.memory_space<vmem>>) attributes {dimension_semantics = [#tpu.dimension_semantics<parallel>], iteration_bounds = array<i64: 1>, scalar_prefetch = 0 : i64, scratch_operands = 0 : i64, tpu.core_type = #tpu.core_type<tc>, window_params = [{transform_indices = @transform_0, window_bounds = array<i64: 2, 8, 32>}, {transform_indices = @transform_1, window_bounds = array<i64: 2, 2, 8, 8>}, {pipeline_mode = #tpu.pipeline_mode<synchronous>, transform_indices = @transform_2, window_bounds = array<i64: 2, 2, 32, 8>}, {pipeline_mode = #tpu.pipeline_mode<synchronous>, transform_indices = @transform_3, window_bounds = array<i64: 2, 2, 8, 32>}, {pipeline_mode = #tpu.pipeline_mode<synchronous>, transform_indices = @transform_4, window_bounds = array<i64: 2, 2, 32, 32>}, {pipeline_mode = #tpu.pipeline_mode<synchronous>, transform_indices = @transform_5, window_bounds = array<i64: 2, 2, 1, 8>}, {pipeline_mode = #tpu.pipeline_mode<synchronous>, transform_indices = @transform_6, window_bounds = array<i64: 2, 2, 1, 32>}, {pipeline_mode = #tpu.pipeline_mode<synchronous>, transform_indices = @transform_7, window_bounds = array<i64: 2, 1, 32>}, {transform_indices = @transform_8, window_bounds = array<i64: 2, 8, 32>}, {transform_indices = @transform_9, window_bounds = array<i64: 2, 8, 32>}]} {
    %c0 = arith.constant 0 : index
    %c0_0 = arith.constant 0 : index
    %c0_1 = arith.constant 0 : index
    %c0_2 = arith.constant 0 : index
    %0 = vector.load %arg2[%c0, %c0_0, %c0_1, %c0_2] : memref<2x2x8x8xbf16, #tpu.memory_space<vmem>>, vector<2x2x8x8xbf16>
    %1 = vector.shape_cast %0 : vector<2x2x8x8xbf16> to vector<4x8x8xbf16>
    %c0_3 = arith.constant 0 : index
    %c0_4 = arith.constant 0 : index
    %c0_5 = arith.constant 0 : index
    %2 = vector.load %arg1[%c0_3, %c0_4, %c0_5] : memref<2x8x32xf32, #tpu.memory_space<vmem>>, vector<2x8x32xf32>
    %c0_6 = arith.constant 0 : index
    %c0_7 = arith.constant 0 : index
    %c0_8 = arith.constant 0 : index
    %c0_9 = arith.constant 0 : index
    %3 = vector.load %arg3[%c0_6, %c0_7, %c0_8, %c0_9] : memref<2x2x32x8xbf16, #tpu.memory_space<vmem>>, vector<1x1x32x8xbf16>
    %4 = vector.shape_cast %3 : vector<1x1x32x8xbf16> to vector<32x8xbf16>
    %5 = vector.shape_cast %2 : vector<2x8x32xf32> to vector<16x32xf32>
    %6 = arith.truncf %5 : vector<16x32xf32> to vector<16x32xbf16>
    %cst = arith.constant dense<0.000000e+00> : vector<16x8xf32>
    %7 = tpu.matmul %6, %4, %cst {dimension_numbers = #tpu.dot_dimension_numbers<[1], [0], [0], [1], [0, 0, 1, 1], [], []>} : vector<16x32xbf16>, vector<32x8xbf16>, vector<16x8xf32> -> vector<16x8xf32>
    %8 = vector.shape_cast %7 : vector<16x8xf32> to vector<2x8x8xf32>
    %c0_10 = arith.constant 0 : index
    %c1 = arith.constant 1 : index
    %c0_11 = arith.constant 0 : index
    %c0_12 = arith.constant 0 : index
    %9 = vector.load %arg3[%c0_10, %c1, %c0_11, %c0_12] : memref<2x2x32x8xbf16, #tpu.memory_space<vmem>>, vector<1x1x32x8xbf16>
    %10 = vector.shape_cast %9 : vector<1x1x32x8xbf16> to vector<32x8xbf16>
    %11 = vector.shape_cast %2 : vector<2x8x32xf32> to vector<16x32xf32>
    %12 = arith.truncf %11 : vector<16x32xf32> to vector<16x32xbf16>
    %cst_13 = arith.constant dense<0.000000e+00> : vector<16x8xf32>
    %13 = tpu.matmul %12, %10, %cst_13 {dimension_numbers = #tpu.dot_dimension_numbers<[1], [0], [0], [1], [0, 0, 1, 1], [], []>} : vector<16x32xbf16>, vector<32x8xbf16>, vector<16x8xf32> -> vector<16x8xf32>
    %14 = vector.shape_cast %13 : vector<16x8xf32> to vector<2x8x8xf32>
    %15 = tpu.concatenate %8, %14 in 0 : vector<2x8x8xf32>, vector<2x8x8xf32> -> vector<4x8x8xf32>
    %16 = arith.truncf %15 : vector<4x8x8xf32> to vector<4x8x8xbf16>
    "tpu.trace_start"() <{level = 10 : i32, message = "bij,bjm->bim"}> : () -> ()
    %cst_14 = arith.constant dense<0.000000e+00> : vector<4x8x8xf32>
    %17 = tpu.matmul %1, %16, %cst_14 {dimension_numbers = #tpu.dot_dimension_numbers<[2], [1], [1], [2], [0, 0, 0, 1, 1, 2], [0], [0]>} : vector<4x8x8xbf16>, vector<4x8x8xbf16>, vector<4x8x8xf32> -> vector<4x8x8xf32>
    "tpu.trace_stop"() : () -> ()
    %18 = vector.extract_strided_slice %17 {offsets = [0, 0, 0], sizes = [2, 8, 8], strides = [1, 1, 1]} : vector<4x8x8xf32> to vector<2x8x8xf32>
    %19 = vector.extract_strided_slice %17 {offsets = [2, 0, 0], sizes = [2, 8, 8], strides = [1, 1, 1]} : vector<4x8x8xf32> to vector<2x8x8xf32>
    %c0_15 = arith.constant 0 : index
    %c0_16 = arith.constant 0 : index
    %c0_17 = arith.constant 0 : index
    %c0_18 = arith.constant 0 : index
    %20 = vector.load %arg6[%c0_15, %c0_16, %c0_17, %c0_18] : memref<2x2x1x8xf32, #tpu.memory_space<vmem>>, vector<1x1x1x8xf32>
    %21 = vector.shape_cast %20 : vector<1x1x1x8xf32> to vector<1x8xf32>
    %22 = vector.shape_cast %21 : vector<1x8xf32> to vector<1x1x8xf32>
    %23 = vector.broadcast %22 : vector<1x1x8xf32> to vector<2x8x8xf32>
    %24 = arith.addf %18, %23 : vector<2x8x8xf32>
    %cst_19 = arith.constant 0.000000e+00 : f32
    %25 = vector.broadcast %cst_19 : f32 to vector<2x8x8xf32>
    %26 = arith.maximumf %24, %25 : vector<2x8x8xf32>
    %c0_20 = arith.constant 0 : index
    %c1_21 = arith.constant 1 : index
    %c0_22 = arith.constant 0 : index
    %c0_23 = arith.constant 0 : index
    %27 = vector.load %arg6[%c0_20, %c1_21, %c0_22, %c0_23] : memref<2x2x1x8xf32, #tpu.memory_space<vmem>>, vector<1x1x1x8xf32>
    %28 = vector.shape_cast %27 : vector<1x1x1x8xf32> to vector<1x8xf32>
    %29 = vector.shape_cast %28 : vector<1x8xf32> to vector<1x1x8xf32>
    %30 = vector.broadcast %29 : vector<1x1x8xf32> to vector<2x8x8xf32>
    %31 = arith.addf %19, %30 : vector<2x8x8xf32>
    %cst_24 = arith.constant 0.000000e+00 : f32
    %32 = vector.broadcast %cst_24 : f32 to vector<2x8x8xf32>
    %33 = arith.maximumf %31, %32 : vector<2x8x8xf32>
    %c0_25 = arith.constant 0 : index
    %c0_26 = arith.constant 0 : index
    %c0_27 = arith.constant 0 : index
    %c0_28 = arith.constant 0 : index
    %34 = vector.load %arg4[%c0_25, %c0_26, %c0_27, %c0_28] : memref<2x2x8x32xbf16, #tpu.memory_space<vmem>>, vector<1x1x8x32xbf16>
    %35 = vector.shape_cast %34 : vector<1x1x8x32xbf16> to vector<8x32xbf16>
    %36 = vector.shape_cast %26 : vector<2x8x8xf32> to vector<16x8xf32>
    %37 = arith.truncf %36 : vector<16x8xf32> to vector<16x8xbf16>
    %cst_29 = arith.constant dense<0.000000e+00> : vector<16x32xf32>
    %38 = tpu.matmul %37, %35, %cst_29 {dimension_numbers = #tpu.dot_dimension_numbers<[1], [0], [0], [1], [0, 0, 1, 1], [], []>} : vector<16x8xbf16>, vector<8x32xbf16>, vector<16x32xf32> -> vector<16x32xf32>
    %39 = vector.shape_cast %38 : vector<16x32xf32> to vector<2x8x32xf32>
    %c0_30 = arith.constant 0 : index
    %c1_31 = arith.constant 1 : index
    %c0_32 = arith.constant 0 : index
    %c0_33 = arith.constant 0 : index
    %40 = vector.load %arg4[%c0_30, %c1_31, %c0_32, %c0_33] : memref<2x2x8x32xbf16, #tpu.memory_space<vmem>>, vector<1x1x8x32xbf16>
    %41 = vector.shape_cast %40 : vector<1x1x8x32xbf16> to vector<8x32xbf16>
    %42 = vector.shape_cast %33 : vector<2x8x8xf32> to vector<16x8xf32>
    %43 = arith.truncf %42 : vector<16x8xf32> to vector<16x8xbf16>
    %cst_34 = arith.constant dense<0.000000e+00> : vector<16x32xf32>
    %44 = tpu.matmul %43, %41, %cst_34 {dimension_numbers = #tpu.dot_dimension_numbers<[1], [0], [0], [1], [0, 0, 1, 1], [], []>} : vector<16x8xbf16>, vector<8x32xbf16>, vector<16x32xf32> -> vector<16x32xf32>
    %45 = vector.shape_cast %44 : vector<16x32xf32> to vector<2x8x32xf32>
    %46 = tpu.concatenate %39, %45 in 0 : vector<2x8x32xf32>, vector<2x8x32xf32> -> vector<4x8x32xf32>
    %47 = arith.truncf %46 : vector<4x8x32xf32> to vector<4x8x32xbf16>
    "tpu.trace_start"() <{level = 10 : i32, message = "bij,bjm->bim"}> : () -> ()
    %cst_35 = arith.constant dense<0.000000e+00> : vector<4x8x32xf32>
    %48 = tpu.matmul %1, %47, %cst_35 {dimension_numbers = #tpu.dot_dimension_numbers<[2], [1], [1], [2], [0, 0, 0, 1, 1, 2], [0], [0]>} : vector<4x8x8xbf16>, vector<4x8x32xbf16>, vector<4x8x32xf32> -> vector<4x8x32xf32>
    "tpu.trace_stop"() : () -> ()
    %49 = vector.extract_strided_slice %48 {offsets = [0, 0, 0], sizes = [2, 8, 32], strides = [1, 1, 1]} : vector<4x8x32xf32> to vector<2x8x32xf32>
    %50 = vector.extract_strided_slice %48 {offsets = [2, 0, 0], sizes = [2, 8, 32], strides = [1, 1, 1]} : vector<4x8x32xf32> to vector<2x8x32xf32>
    %c0_36 = arith.constant 0 : index
    %c0_37 = arith.constant 0 : index
    %c0_38 = arith.constant 0 : index
    %c0_39 = arith.constant 0 : index
    %51 = vector.load %arg7[%c0_36, %c0_37, %c0_38, %c0_39] : memref<2x2x1x32xf32, #tpu.memory_space<vmem>>, vector<1x1x1x32xf32>
    %52 = vector.shape_cast %51 : vector<1x1x1x32xf32> to vector<1x32xf32>
    %53 = vector.shape_cast %52 : vector<1x32xf32> to vector<1x1x32xf32>
    %54 = vector.broadcast %53 : vector<1x1x32xf32> to vector<2x8x32xf32>
    %55 = arith.addf %49, %54 : vector<2x8x32xf32>
    %cst_40 = arith.constant 0.000000e+00 : f32
    %56 = vector.broadcast %cst_40 : f32 to vector<2x8x32xf32>
    %57 = arith.maximumf %55, %56 : vector<2x8x32xf32>
    %c0_41 = arith.constant 0 : index
    %c1_42 = arith.constant 1 : index
    %c0_43 = arith.constant 0 : index
    %c0_44 = arith.constant 0 : index
    %58 = vector.load %arg7[%c0_41, %c1_42, %c0_43, %c0_44] : memref<2x2x1x32xf32, #tpu.memory_space<vmem>>, vector<1x1x1x32xf32>
    %59 = vector.shape_cast %58 : vector<1x1x1x32xf32> to vector<1x32xf32>
    %60 = vector.shape_cast %59 : vector<1x32xf32> to vector<1x1x32xf32>
    %61 = vector.broadcast %60 : vector<1x1x32xf32> to vector<2x8x32xf32>
    %62 = arith.addf %50, %61 : vector<2x8x32xf32>
    %cst_45 = arith.constant 0.000000e+00 : f32
    %63 = vector.broadcast %cst_45 : f32 to vector<2x8x32xf32>
    %64 = arith.maximumf %62, %63 : vector<2x8x32xf32>
    %c0_46 = arith.constant 0 : index
    %c0_47 = arith.constant 0 : index
    %c0_48 = arith.constant 0 : index
    %c0_49 = arith.constant 0 : index
    %65 = vector.load %arg5[%c0_46, %c0_47, %c0_48, %c0_49] : memref<2x2x32x32xbf16, #tpu.memory_space<vmem>>, vector<1x1x32x32xbf16>
    %66 = vector.shape_cast %65 : vector<1x1x32x32xbf16> to vector<32x32xbf16>
    %67 = vector.shape_cast %57 : vector<2x8x32xf32> to vector<16x32xf32>
    %68 = arith.truncf %67 : vector<16x32xf32> to vector<16x32xbf16>
    %cst_50 = arith.constant dense<0.000000e+00> : vector<16x32xf32>
    %69 = tpu.matmul %68, %66, %cst_50 {dimension_numbers = #tpu.dot_dimension_numbers<[1], [0], [0], [1], [0, 0, 1, 1], [], []>} : vector<16x32xbf16>, vector<32x32xbf16>, vector<16x32xf32> -> vector<16x32xf32>
    %70 = vector.shape_cast %69 : vector<16x32xf32> to vector<2x8x32xf32>
    %c0_51 = arith.constant 0 : index
    %c1_52 = arith.constant 1 : index
    %c0_53 = arith.constant 0 : index
    %c0_54 = arith.constant 0 : index
    %71 = vector.load %arg5[%c0_51, %c1_52, %c0_53, %c0_54] : memref<2x2x32x32xbf16, #tpu.memory_space<vmem>>, vector<1x1x32x32xbf16>
    %72 = vector.shape_cast %71 : vector<1x1x32x32xbf16> to vector<32x32xbf16>
    %73 = vector.shape_cast %64 : vector<2x8x32xf32> to vector<16x32xf32>
    %74 = arith.truncf %73 : vector<16x32xf32> to vector<16x32xbf16>
    %cst_55 = arith.constant dense<0.000000e+00> : vector<16x32xf32>
    %75 = tpu.matmul %74, %72, %cst_55 {dimension_numbers = #tpu.dot_dimension_numbers<[1], [0], [0], [1], [0, 0, 1, 1], [], []>} : vector<16x32xbf16>, vector<32x32xbf16>, vector<16x32xf32> -> vector<16x32xf32>
    %76 = vector.shape_cast %75 : vector<16x32xf32> to vector<2x8x32xf32>
    %77 = arith.addf %70, %76 : vector<2x8x32xf32>
    %c0_56 = arith.constant 0 : index
    %c0_57 = arith.constant 0 : index
    %c0_58 = arith.constant 0 : index
    %78 = vector.load %arg8[%c0_56, %c0_57, %c0_58] : memref<2x1x32xf32, #tpu.memory_space<vmem>>, vector<1x1x32xf32>
    %79 = vector.shape_cast %78 : vector<1x1x32xf32> to vector<1x32xf32>
    %80 = vector.shape_cast %79 : vector<1x32xf32> to vector<1x1x32xf32>
    %81 = vector.broadcast %80 : vector<1x1x32xf32> to vector<2x8x32xf32>
    %82 = arith.addf %77, %81 : vector<2x8x32xf32>
    %cst_59 = arith.constant 0.000000e+00 : f32
    %83 = vector.broadcast %cst_59 : f32 to vector<2x8x32xf32>
    %84 = arith.maximumf %82, %83 : vector<2x8x32xf32>
    %c1_60 = arith.constant 1 : index
    %c0_61 = arith.constant 0 : index
    %c0_62 = arith.constant 0 : index
    %c0_63 = arith.constant 0 : index
    %85 = vector.load %arg3[%c1_60, %c0_61, %c0_62, %c0_63] : memref<2x2x32x8xbf16, #tpu.memory_space<vmem>>, vector<1x1x32x8xbf16>
    %86 = vector.shape_cast %85 : vector<1x1x32x8xbf16> to vector<32x8xbf16>
    %87 = vector.shape_cast %84 : vector<2x8x32xf32> to vector<16x32xf32>
    %88 = arith.truncf %87 : vector<16x32xf32> to vector<16x32xbf16>
    %cst_64 = arith.constant dense<0.000000e+00> : vector<16x8xf32>
    %89 = tpu.matmul %88, %86, %cst_64 {dimension_numbers = #tpu.dot_dimension_numbers<[1], [0], [0], [1], [0, 0, 1, 1], [], []>} : vector<16x32xbf16>, vector<32x8xbf16>, vector<16x8xf32> -> vector<16x8xf32>
    %90 = vector.shape_cast %89 : vector<16x8xf32> to vector<2x8x8xf32>
    %c1_65 = arith.constant 1 : index
    %c1_66 = arith.constant 1 : index
    %c0_67 = arith.constant 0 : index
    %c0_68 = arith.constant 0 : index
    %91 = vector.load %arg3[%c1_65, %c1_66, %c0_67, %c0_68] : memref<2x2x32x8xbf16, #tpu.memory_space<vmem>>, vector<1x1x32x8xbf16>
    %92 = vector.shape_cast %91 : vector<1x1x32x8xbf16> to vector<32x8xbf16>
    %93 = vector.shape_cast %84 : vector<2x8x32xf32> to vector<16x32xf32>
    %94 = arith.truncf %93 : vector<16x32xf32> to vector<16x32xbf16>
    %cst_69 = arith.constant dense<0.000000e+00> : vector<16x8xf32>
    %95 = tpu.matmul %94, %92, %cst_69 {dimension_numbers = #tpu.dot_dimension_numbers<[1], [0], [0], [1], [0, 0, 1, 1], [], []>} : vector<16x32xbf16>, vector<32x8xbf16>, vector<16x8xf32> -> vector<16x8xf32>
    %96 = vector.shape_cast %95 : vector<16x8xf32> to vector<2x8x8xf32>
    %97 = tpu.concatenate %90, %96 in 0 : vector<2x8x8xf32>, vector<2x8x8xf32> -> vector<4x8x8xf32>
    %98 = arith.truncf %97 : vector<4x8x8xf32> to vector<4x8x8xbf16>
    "tpu.trace_start"() <{level = 10 : i32, message = "bij,bjm->bim"}> : () -> ()
    %cst_70 = arith.constant dense<0.000000e+00> : vector<4x8x8xf32>
    %99 = tpu.matmul %1, %98, %cst_70 {dimension_numbers = #tpu.dot_dimension_numbers<[2], [1], [1], [2], [0, 0, 0, 1, 1, 2], [0], [0]>} : vector<4x8x8xbf16>, vector<4x8x8xbf16>, vector<4x8x8xf32> -> vector<4x8x8xf32>
    "tpu.trace_stop"() : () -> ()
    %100 = vector.extract_strided_slice %99 {offsets = [0, 0, 0], sizes = [2, 8, 8], strides = [1, 1, 1]} : vector<4x8x8xf32> to vector<2x8x8xf32>
    %101 = vector.extract_strided_slice %99 {offsets = [2, 0, 0], sizes = [2, 8, 8], strides = [1, 1, 1]} : vector<4x8x8xf32> to vector<2x8x8xf32>
    %c1_71 = arith.constant 1 : index
    %c0_72 = arith.constant 0 : index
    %c0_73 = arith.constant 0 : index
    %c0_74 = arith.constant 0 : index
    %102 = vector.load %arg6[%c1_71, %c0_72, %c0_73, %c0_74] : memref<2x2x1x8xf32, #tpu.memory_space<vmem>>, vector<1x1x1x8xf32>
    %103 = vector.shape_cast %102 : vector<1x1x1x8xf32> to vector<1x8xf32>
    %104 = vector.shape_cast %103 : vector<1x8xf32> to vector<1x1x8xf32>
    %105 = vector.broadcast %104 : vector<1x1x8xf32> to vector<2x8x8xf32>
    %106 = arith.addf %100, %105 : vector<2x8x8xf32>
    %cst_75 = arith.constant 0.000000e+00 : f32
    %107 = vector.broadcast %cst_75 : f32 to vector<2x8x8xf32>
    %108 = arith.maximumf %106, %107 : vector<2x8x8xf32>
    %c1_76 = arith.constant 1 : index
    %c1_77 = arith.constant 1 : index
    %c0_78 = arith.constant 0 : index
    %c0_79 = arith.constant 0 : index
    %109 = vector.load %arg6[%c1_76, %c1_77, %c0_78, %c0_79] : memref<2x2x1x8xf32, #tpu.memory_space<vmem>>, vector<1x1x1x8xf32>
    %110 = vector.shape_cast %109 : vector<1x1x1x8xf32> to vector<1x8xf32>
    %111 = vector.shape_cast %110 : vector<1x8xf32> to vector<1x1x8xf32>
    %112 = vector.broadcast %111 : vector<1x1x8xf32> to vector<2x8x8xf32>
    %113 = arith.addf %101, %112 : vector<2x8x8xf32>
    %cst_80 = arith.constant 0.000000e+00 : f32
    %114 = vector.broadcast %cst_80 : f32 to vector<2x8x8xf32>
    %115 = arith.maximumf %113, %114 : vector<2x8x8xf32>
    %c1_81 = arith.constant 1 : index
    %c0_82 = arith.constant 0 : index
    %c0_83 = arith.constant 0 : index
    %c0_84 = arith.constant 0 : index
    %116 = vector.load %arg4[%c1_81, %c0_82, %c0_83, %c0_84] : memref<2x2x8x32xbf16, #tpu.memory_space<vmem>>, vector<1x1x8x32xbf16>
    %117 = vector.shape_cast %116 : vector<1x1x8x32xbf16> to vector<8x32xbf16>
    %118 = vector.shape_cast %108 : vector<2x8x8xf32> to vector<16x8xf32>
    %119 = arith.truncf %118 : vector<16x8xf32> to vector<16x8xbf16>
    %cst_85 = arith.constant dense<0.000000e+00> : vector<16x32xf32>
    %120 = tpu.matmul %119, %117, %cst_85 {dimension_numbers = #tpu.dot_dimension_numbers<[1], [0], [0], [1], [0, 0, 1, 1], [], []>} : vector<16x8xbf16>, vector<8x32xbf16>, vector<16x32xf32> -> vector<16x32xf32>
    %121 = vector.shape_cast %120 : vector<16x32xf32> to vector<2x8x32xf32>
    %c1_86 = arith.constant 1 : index
    %c1_87 = arith.constant 1 : index
    %c0_88 = arith.constant 0 : index
    %c0_89 = arith.constant 0 : index
    %122 = vector.load %arg4[%c1_86, %c1_87, %c0_88, %c0_89] : memref<2x2x8x32xbf16, #tpu.memory_space<vmem>>, vector<1x1x8x32xbf16>
    %123 = vector.shape_cast %122 : vector<1x1x8x32xbf16> to vector<8x32xbf16>
    %124 = vector.shape_cast %115 : vector<2x8x8xf32> to vector<16x8xf32>
    %125 = arith.truncf %124 : vector<16x8xf32> to vector<16x8xbf16>
    %cst_90 = arith.constant dense<0.000000e+00> : vector<16x32xf32>
    %126 = tpu.matmul %125, %123, %cst_90 {dimension_numbers = #tpu.dot_dimension_numbers<[1], [0], [0], [1], [0, 0, 1, 1], [], []>} : vector<16x8xbf16>, vector<8x32xbf16>, vector<16x32xf32> -> vector<16x32xf32>
    %127 = vector.shape_cast %126 : vector<16x32xf32> to vector<2x8x32xf32>
    %128 = tpu.concatenate %121, %127 in 0 : vector<2x8x32xf32>, vector<2x8x32xf32> -> vector<4x8x32xf32>
    %129 = arith.truncf %128 : vector<4x8x32xf32> to vector<4x8x32xbf16>
    "tpu.trace_start"() <{level = 10 : i32, message = "bij,bjm->bim"}> : () -> ()
    %cst_91 = arith.constant dense<0.000000e+00> : vector<4x8x32xf32>
    %130 = tpu.matmul %1, %129, %cst_91 {dimension_numbers = #tpu.dot_dimension_numbers<[2], [1], [1], [2], [0, 0, 0, 1, 1, 2], [0], [0]>} : vector<4x8x8xbf16>, vector<4x8x32xbf16>, vector<4x8x32xf32> -> vector<4x8x32xf32>
    "tpu.trace_stop"() : () -> ()
    %131 = vector.extract_strided_slice %130 {offsets = [0, 0, 0], sizes = [2, 8, 32], strides = [1, 1, 1]} : vector<4x8x32xf32> to vector<2x8x32xf32>
    %132 = vector.extract_strided_slice %130 {offsets = [2, 0, 0], sizes = [2, 8, 32], strides = [1, 1, 1]} : vector<4x8x32xf32> to vector<2x8x32xf32>
    %c1_92 = arith.constant 1 : index
    %c0_93 = arith.constant 0 : index
    %c0_94 = arith.constant 0 : index
    %c0_95 = arith.constant 0 : index
    %133 = vector.load %arg7[%c1_92, %c0_93, %c0_94, %c0_95] : memref<2x2x1x32xf32, #tpu.memory_space<vmem>>, vector<1x1x1x32xf32>
    %134 = vector.shape_cast %133 : vector<1x1x1x32xf32> to vector<1x32xf32>
    %135 = vector.shape_cast %134 : vector<1x32xf32> to vector<1x1x32xf32>
    %136 = vector.broadcast %135 : vector<1x1x32xf32> to vector<2x8x32xf32>
    %137 = arith.addf %131, %136 : vector<2x8x32xf32>
    %cst_96 = arith.constant 0.000000e+00 : f32
    %138 = vector.broadcast %cst_96 : f32 to vector<2x8x32xf32>
    %139 = arith.maximumf %137, %138 : vector<2x8x32xf32>
    %c1_97 = arith.constant 1 : index
    %c1_98 = arith.constant 1 : index
    %c0_99 = arith.constant 0 : index
    %c0_100 = arith.constant 0 : index
    %140 = vector.load %arg7[%c1_97, %c1_98, %c0_99, %c0_100] : memref<2x2x1x32xf32, #tpu.memory_space<vmem>>, vector<1x1x1x32xf32>
    %141 = vector.shape_cast %140 : vector<1x1x1x32xf32> to vector<1x32xf32>
    %142 = vector.shape_cast %141 : vector<1x32xf32> to vector<1x1x32xf32>
    %143 = vector.broadcast %142 : vector<1x1x32xf32> to vector<2x8x32xf32>
    %144 = arith.addf %132, %143 : vector<2x8x32xf32>
    %cst_101 = arith.constant 0.000000e+00 : f32
    %145 = vector.broadcast %cst_101 : f32 to vector<2x8x32xf32>
    %146 = arith.maximumf %144, %145 : vector<2x8x32xf32>
    %c1_102 = arith.constant 1 : index
    %c0_103 = arith.constant 0 : index
    %c0_104 = arith.constant 0 : index
    %c0_105 = arith.constant 0 : index
    %147 = vector.load %arg5[%c1_102, %c0_103, %c0_104, %c0_105] : memref<2x2x32x32xbf16, #tpu.memory_space<vmem>>, vector<1x1x32x32xbf16>
    %148 = vector.shape_cast %147 : vector<1x1x32x32xbf16> to vector<32x32xbf16>
    %149 = vector.shape_cast %139 : vector<2x8x32xf32> to vector<16x32xf32>
    %150 = arith.truncf %149 : vector<16x32xf32> to vector<16x32xbf16>
    %cst_106 = arith.constant dense<0.000000e+00> : vector<16x32xf32>
    %151 = tpu.matmul %150, %148, %cst_106 {dimension_numbers = #tpu.dot_dimension_numbers<[1], [0], [0], [1], [0, 0, 1, 1], [], []>} : vector<16x32xbf16>, vector<32x32xbf16>, vector<16x32xf32> -> vector<16x32xf32>
    %152 = vector.shape_cast %151 : vector<16x32xf32> to vector<2x8x32xf32>
    %c1_107 = arith.constant 1 : index
    %c1_108 = arith.constant 1 : index
    %c0_109 = arith.constant 0 : index
    %c0_110 = arith.constant 0 : index
    %153 = vector.load %arg5[%c1_107, %c1_108, %c0_109, %c0_110] : memref<2x2x32x32xbf16, #tpu.memory_space<vmem>>, vector<1x1x32x32xbf16>
    %154 = vector.shape_cast %153 : vector<1x1x32x32xbf16> to vector<32x32xbf16>
    %155 = vector.shape_cast %146 : vector<2x8x32xf32> to vector<16x32xf32>
    %156 = arith.truncf %155 : vector<16x32xf32> to vector<16x32xbf16>
    %cst_111 = arith.constant dense<0.000000e+00> : vector<16x32xf32>
    %157 = tpu.matmul %156, %154, %cst_111 {dimension_numbers = #tpu.dot_dimension_numbers<[1], [0], [0], [1], [0, 0, 1, 1], [], []>} : vector<16x32xbf16>, vector<32x32xbf16>, vector<16x32xf32> -> vector<16x32xf32>
    %158 = vector.shape_cast %157 : vector<16x32xf32> to vector<2x8x32xf32>
    %159 = arith.addf %152, %158 : vector<2x8x32xf32>
    %c1_112 = arith.constant 1 : index
    %c0_113 = arith.constant 0 : index
    %c0_114 = arith.constant 0 : index
    %160 = vector.load %arg8[%c1_112, %c0_113, %c0_114] : memref<2x1x32xf32, #tpu.memory_space<vmem>>, vector<1x1x32xf32>
    %161 = vector.shape_cast %160 : vector<1x1x32xf32> to vector<1x32xf32>
    %162 = vector.shape_cast %161 : vector<1x32xf32> to vector<1x1x32xf32>
    %163 = vector.broadcast %162 : vector<1x1x32xf32> to vector<2x8x32xf32>
    %164 = arith.addf %159, %163 : vector<2x8x32xf32>
    %cst_115 = arith.constant 0.000000e+00 : f32
    %165 = vector.broadcast %cst_115 : f32 to vector<2x8x32xf32>
    %166 = arith.maximumf %164, %165 : vector<2x8x32xf32>
    %c0_116 = arith.constant 0 : index
    %c0_117 = arith.constant 0 : index
    %c0_118 = arith.constant 0 : index
    %167 = vector.load %arg9[%c0_116, %c0_117, %c0_118] : memref<2x8x32xf32, #tpu.memory_space<vmem>>, vector<2x8x32xf32>
    tpu.vector_store %arg9[%c0_116, %c0_117, %c0_118], %166 {strides = array<i32>} : memref<2x8x32xf32, #tpu.memory_space<vmem>>, vector<2x8x32xf32>,
    %c0_119 = arith.constant 0 : index
    %c0_120 = arith.constant 0 : index
    %c0_121 = arith.constant 0 : index
    %168 = vector.load %arg1[%c0_119, %c0_120, %c0_121] : memref<2x8x32xf32, #tpu.memory_space<vmem>>, vector<2x8x32xf32>
    %169 = arith.addf %168, %166 : vector<2x8x32xf32>
    %c0_122 = arith.constant 0 : index
    %c0_123 = arith.constant 0 : index
    %c0_124 = arith.constant 0 : index
    %170 = vector.load %arg10[%c0_122, %c0_123, %c0_124] : memref<2x8x32xf32, #tpu.memory_space<vmem>>, vector<2x8x32xf32>
    tpu.vector_store %arg10[%c0_122, %c0_123, %c0_124], %169 {strides = array<i32>} : memref<2x8x32xf32, #tpu.memory_space<vmem>>, vector<2x8x32xf32>,
    return
  }
  func.func @transform_0(%arg0: i32) -> (i32, i32, i32) {
    %c0_i32 = arith.constant 0 : i32
    %c0_i32_0 = arith.constant 0 : i32
    %c0_i32_1 = arith.constant 0 : i32
    return %arg0, %c0_i32, %c0_i32_0 : i32, i32, i32
  }
  func.func @transform_1(%arg0: i32) -> (i32, i32, i32, i32) {
    %c0_i32 = arith.constant 0 : i32
    %c0_i32_0 = arith.constant 0 : i32
    %c0_i32_1 = arith.constant 0 : i32
    %c0_i32_2 = arith.constant 0 : i32
    return %c0_i32, %arg0, %c0_i32_0, %c0_i32_1 : i32, i32, i32, i32
  }
  func.func @transform_2(%arg0: i32) -> (i32, i32, i32, i32) {
    %c0_i32 = arith.constant 0 : i32
    %c0_i32_0 = arith.constant 0 : i32
    %c0_i32_1 = arith.constant 0 : i32
    %c0_i32_2 = arith.constant 0 : i32
    %c0_i32_3 = arith.constant 0 : i32
    return %c0_i32, %c0_i32_0, %c0_i32_1, %c0_i32_2 : i32, i32, i32, i32
  }
  func.func @transform_3(%arg0: i32) -> (i32, i32, i32, i32) {
    %c0_i32 = arith.constant 0 : i32
    %c0_i32_0 = arith.constant 0 : i32
    %c0_i32_1 = arith.constant 0 : i32
    %c0_i32_2 = arith.constant 0 : i32
    %c0_i32_3 = arith.constant 0 : i32
    return %c0_i32, %c0_i32_0, %c0_i32_1, %c0_i32_2 : i32, i32, i32, i32
  }
  func.func @transform_4(%arg0: i32) -> (i32, i32, i32, i32) {
    %c0_i32 = arith.constant 0 : i32
    %c0_i32_0 = arith.constant 0 : i32
    %c0_i32_1 = arith.constant 0 : i32
    %c0_i32_2 = arith.constant 0 : i32
    %c0_i32_3 = arith.constant 0 : i32
    return %c0_i32, %c0_i32_0, %c0_i32_1, %c0_i32_2 : i32, i32, i32, i32
  }
  func.func @transform_5(%arg0: i32) -> (i32, i32, i32, i32) {
    %c0_i32 = arith.constant 0 : i32
    %c0_i32_0 = arith.constant 0 : i32
    %c0_i32_1 = arith.constant 0 : i32
    %c0_i32_2 = arith.constant 0 : i32
    %c0_i32_3 = arith.constant 0 : i32
    return %c0_i32, %c0_i32_0, %c0_i32_1, %c0_i32_2 : i32, i32, i32, i32
  }
  func.func @transform_6(%arg0: i32) -> (i32, i32, i32, i32) {
    %c0_i32 = arith.constant 0 : i32
    %c0_i32_0 = arith.constant 0 : i32
    %c0_i32_1 = arith.constant 0 : i32
    %c0_i32_2 = arith.constant 0 : i32
    %c0_i32_3 = arith.constant 0 : i32
    return %c0_i32, %c0_i32_0, %c0_i32_1, %c0_i32_2 : i32, i32, i32, i32
  }
  func.func @transform_7(%arg0: i32) -> (i32, i32, i32) {
    %c0_i32 = arith.constant 0 : i32
    %c0_i32_0 = arith.constant 0 : i32
    %c0_i32_1 = arith.constant 0 : i32
    %c0_i32_2 = arith.constant 0 : i32
    return %c0_i32, %c0_i32_0, %c0_i32_1 : i32, i32, i32
  }
  func.func @transform_8(%arg0: i32) -> (i32, i32, i32) {
    %c0_i32 = arith.constant 0 : i32
    %c0_i32_0 = arith.constant 0 : i32
    %c0_i32_1 = arith.constant 0 : i32
    return %arg0, %c0_i32, %c0_i32_0 : i32, i32, i32
  }
  func.func @transform_9(%arg0: i32) -> (i32, i32, i32) {
    %c0_i32 = arith.constant 0 : i32
    %c0_i32_0 = arith.constant 0 : i32
    %c0_i32_1 = arith.constant 0 : i32
    return %arg0, %c0_i32, %c0_i32_0 : i32, i32, i32
  }
}

</mosaic_0001>

<bundles_post_ra>
// kernel: tpu_custom_call.1
= control target key start
LH: loop header
LB: loop body
LE: loop exit
PB: predicated region body
PF: predicated region fallthrough
CT: control target
= control target key end

     0   :  { %6 = vsyncpa [#allocation3], 0  ;;  %s340_s0 = inlined_call_operand.hbm [shape: f32[8,128], index: 0, kind: input, shape index: {}]   ;;  %s341_s1 = inlined_call_operand.hbm [shape: f32[8,128], index: 1, kind: output, shape index: {}]  }
   0x1   :  { %7 = vsyncpa [#allocation4], 0  ;;  %s261_s6 = smov 0  }
   0x2 LB: > { %s144_s7 = sadd.s32 4294967295, %s247_s6   ;;  %p145_p0 = scmp.ge.s32.totalorder %s247_s6, 1  ;;  %s247_s6 = sphi %s261_s6, %s13_s6  }
   0x3   : > { %p60_p1 = scmp.lt.s32.totalorder %s247_s6, 3  ;;  %p275_p3 = scmp.eq.s32.totalorder %s144_s7, 0 }
   0x4   : > { %s249_s10 = smov [#allocation2]   ;;  %s179_s15 = scalar_lea.hbm %s340_s0, 128 }
   0x5   : > { %p269_p2 = pnand %p145_p0, %p60_p1  ;;  %s73_s11 = sshll.u32 %s249_s10, 4  ;;  %s74_s11 = int_to_ptr.vmem [resolvable:$true] %s73_s11 }
   0x6   : > { %s346_s9 = scalar_select %p275_p3, 1, 0 }
   0x7   : > { %s345_s8 = scalar_select %p269_p2, 1, 0 }
   0x8   : > { %p161_p4 = pneg %p269_p2  ;;  %p180_p6 = scmp.ne.s32.totalorder %s340_s0, %s179_s15 }
   0x9   : > { %p186_p10 = scmp.lt.u32.totalorder %s179_s15, %s340_s0 }
   0xa   : > { %p283_p5 = pnand %p275_p3, %p161_p4 }
   0xc   : > { %p181_p7 = pneg %p283_p5 }
   0xe   : > { %p182_p8 = pnand %p181_p7, %p180_p6 }
  0x10   : > { %p183_p9 = pneg %p182_p8 }
  0x12   : > { %p188_p11 = pnand %p186_p10, %p183_p9 }
  0x14   : > { %191 = shalt.err (!%p188_p11)
}
  0x15   : > { %s192_s20 = scalar_lea.vmem %s74_s11, 128  ;;  %p200_p1 = scmp.lt.s32.totalorder %s74_s11, %s74_s11 }
  0x16   : > { %p193_p12 = scmp.ne.s32.totalorder %s74_s11, %s192_s20  ;;  %p201_p4 = scmp.lt.s32.totalorder %s192_s20, %s192_s20 }
  0x18   : > { %p195_p13 = pnand %p193_p12, %p181_p7  ;;  %p202_p3 = por %p201_p4, %p200_p1 }
  0x1a   : > { %p196_p0 = pneg %p195_p13 }
  0x1c   : > { %p203_p2 = pnand %p202_p3, %p196_p0 }
  0x1e   : > { %206 = shalt.err (!%p203_p2)
}
  0x1f   : > { %164 = dma.hbm_to_vmem [thread:$0]  (!%p283_p5), %s340_s0, 128, %s74_s11, [#allocation3]  }
  0x20   : > { %p348_p6 = scmp.ne.s32.totalorder %s345_s8, 0 }
  0x21   : > { %p349_p8 = scmp.ne.s32.totalorder (!%p348_p6), %s346_s9, 0 }
  0x22   : > { %86 = sbr.rel (%p348_p6) target bundleno = 67 (0x43), region = 24 }
  0x29   : > { %238 = dma.done.wait (%p349_p8), [#allocation3], 128  }
  0x2a   : > { %240 = vsyncadd (%p349_p8), [#allocation3], 4294967168  ;;  %s250_s23 = smov [#allocation5]   ;;  %p311_p2 = scmp.eq.s32.totalorder %s144_s7, 1  ;;  %v96_v0 = vld [vmem:[#allocation2] sm:$0xff] }
  0x2b   : > { %s105_s24 = sshll.u32 %s250_s23, 4  ;;  %97 = vst [vmem:[#allocation5] sm:$0xff] %v96_v0  ;;  %s106_s24 = int_to_ptr.vmem [resolvable:$true] %s105_s24 }
  0x2c   : > { %s207_s26 = scalar_lea.vmem %s106_s24, 128  ;;  %p214_p9 = scmp.lt.s32.totalorder %s106_s24, %s106_s24 }
  0x2d   : > { %p208_p3 = scmp.ne.s32.totalorder %s106_s24, %s207_s26  ;;  %p215_p10 = scmp.lt.s32.totalorder %s207_s26, %s207_s26 }
  0x2f   : > { %p209_p5 = pnand %p208_p3, %p311_p2  ;;  %p216_p11 = por %p215_p10, %p214_p9 }
  0x31   : > { %p210_p7 = pneg %p209_p5 }
  0x33   : > { %p217_p12 = pnand %p216_p11, %p210_p7 }
  0x35   : > { %220 = shalt.err (!%p217_p12)
}
  0x36   : > { %s221_s29 = scalar_lea.hbm %s341_s1, 128 }
  0x37   : > { %p222_p13 = scmp.ne.s32.totalorder %s341_s1, %s221_s29  ;;  %p227_p4 = scmp.lt.u32.totalorder %s221_s29, %s341_s1 }
  0x39   : > { %p223_p0 = pnand %p222_p13, %p311_p2 }
  0x3b   : > { %p224_p1 = pneg %p223_p0 }
  0x3d   : > { %p229_p6 = pnand %p227_p4, %p224_p1 }
  0x3f   : > { %232 = shalt.err (!%p229_p6)
}
  0x40   : > { %158 = dma.vmem_to_hbm [thread:$0]  (%p311_p2), %s106_s24, 128, %s341_s1, [#allocation4]  }
  0x41   : > { %242 = dma.done.wait (%p311_p2), [#allocation4], 128  }
  0x42   : > { %244 = vsyncadd (%p311_p2), [#allocation4], 4294967168 }
  0x43 PF: > { %s13_s6 = sadd.s32 1, %s247_s6  }
  0x44   : > { %p10_p8 = scmp.ge.s32.totalorder %s13_s6, 4  }
  0x46   :  { %12 = sbr.rel (!%p10_p8) target bundleno = 2 (0x2), region = 53 }
  0x4d   :  { %118 = vsyncpa [#allocation3], 1 }
  0x4e   :  { %120 = vsyncpa [#allocation3 + $0x1], 1 }
  0x4f   :  { %121 = vsyncpa [#allocation4], 1 }
  0x50   :  { %123 = vsyncpa [#allocation4 + $0x1], 1 }

// kernel: _num_encoder_forward_impl.1
= control target key start
LH: loop header
LB: loop body
LE: loop exit
PB: predicated region body
PF: predicated region fallthrough
CT: control target
= control target key end

     0   :  { %v1973_v1 = vmov 0.0   ;;  %vm1974_vm0 = vmmov 0   ;;  %vm56_vm1 = vcmask 261120   ;;  %s2330_s0 = inlined_call_operand.vmem [shape: f32[2,8,32], index: 0, kind: input, shape index: {}]   ;;  %s2331_s1 = inlined_call_operand.vmem [shape: bf16[2,2,8,8], index: 1, kind: input, shape index: {}]   ;;  %s2332_s2 = inlined_call_operand.vmem [shape: bf16[2,2,32,8], index: 2, kind: input, shape index: {}]   ;;  %s2333_s3 = inlined_call_operand.vmem [shape: bf16[2,2,8,32], index: 3, kind: input, shape index: {}]   ;;  %s2334_s4 = inlined_call_operand.vmem [shape: bf16[2,2,32,32], index: 4, kind: input, shape index: {}]   ;;  %s2335_s5 = inlined_call_operand.vmem [shape: f32[2,2,1,8], index: 5, kind: input, shape index: {}]   ;;  %s2336_s6 = inlined_call_operand.vmem [shape: f32[2,2,1,32], index: 6, kind: input, shape index: {}]   ;;  %s2337_s7 = inlined_call_operand.vmem [shape: f32[2,1,32], index: 7, kind: input, shape index: {}]   ;;  %s2338_s8 = inlined_call_operand.vmem [shape: f32[2,8,32], index: 8, kind: output, shape index: {0}]   ;;  %s2339_s9 = inlined_call_operand.hbm [shape: f32[2,8,32], index: 9, kind: output, shape index: {1}]  }
   0x1   :  { %v1933_v0 = vld [vmem:[%s2332_s2] sm:$0xff]   ;;  %1744 = vmatprep.subr.bf16.mxu0 %v1973_v1  ;;  %v1934_v2 = vld [vmem:[%s2332_s2 + $0x8] sm:$0xff]   ;;  %1752 = vmatprep.subr.bf16.mxu1 %v1973_v1  ;;  %v1935_v3 = vld [vmem:[%s2332_s2 + $0x10] sm:$0xff]  }
   0x2   :  { %1745 = vmatpush3.bf16.msra.mxu0 %v1933_v0  ;;  %1748 = vmatprep.mubr.msk.bf16.mxu0 %vm1974_vm0, %v1973_v1  ;;  %v2045_v4 = vld [vmem:[%s2330_s0] sm:$0xff]  ;;  %v2050_v5 = vld [vmem:[%s2330_s0 + $0x8] sm:$0xff]  ;;  %v1936_v6 = vld [vmem:[%s2332_s2 + $0x18] sm:$0xff]  }
   0x3   :  { %1746 = vmatprep.subr.bf16.mxu0 %v1973_v1  ;;  %1756 = vmatprep.mubr.msk.bf16.mxu1 %vm1974_vm0, %v1973_v1  ;;  %v43_v7 = vpack.c.bf16 %v2050_v5, %v2045_v4 }
   0x4   :  { %1753 = vmatpush3.bf16.msra.mxu1 %v1935_v3 }
   0x5   :  { %1754 = vmatprep.subr.bf16.mxu1 %v1973_v1 }
   0x6   :  { %1747 = vmatpush3.bf16.msra.mxu0 %v1934_v2 }
   0x7   :  { %1760 = vmatprep.subr.bf16.mxu0 %v1973_v1 }
   0x8   :  { %1755 = vmatpush3.bf16.msra.mxu1 %v1936_v6 }
   0x9   :  { %1749 = vmatmul.mubr.msk.bf16.vlgmr.msra.gmra.mrb[0].mxu0 %vm56_vm1, %v43_v7  ;;  %1766 = vmatprep.subr.bf16.mxu1 %v1973_v1 }
   0xa   :  { %1762 = vmatprep.mubr.msk.bf16.mxu0 %vm1974_vm0, %v1973_v1 }
   0xb   :  { %1757 = vmatmul.mubr.msk.bf16.vlgmr.msra.gmra.mrb[0].mxu1 %vm56_vm1, %v43_v7 }
   0xc   :  { %1768 = vmatprep.mubr.msk.bf16.mxu1 %vm1974_vm0, %v1973_v1 }
   0xd   :  { %15 = vsyncpa [#allocation3], 0  ;;  %vm167_vm2 = vcmask 1043456   ;;  %v2072_v19 = vld [vmem:[%s2331_s1] sm:$0xf]  ;;  %vm163_vm3 = vcmask 64512  }
   0xe   :  { %v2080_v24 = vld [vmem:[%s2331_s1 + $0x4] sm:$0xf]  ;;  %v2097_v26 = vld [vmem:[%s2331_s1 + $0x8] sm:$0xf]  ;;  %v2102_v27 = vld [vmem:[%s2331_s1 + $0xc] sm:$0xf] }
   0xf   :  { %v372_v28 = vld [vmem:[%s2333_s3] sm:$0xf]  ;;  %v1610_v30 = vld [vmem:[%s2333_s3 + $0x4] sm:$0xf]  ;;  %s1975_s29 = smov [#allocation2]  }
  0x10   :  { %v378_v29 = vsel %vm167_vm2, %v372_v28, 0  ;;  %v428_v31 = vsel %vm167_vm2, %v1610_v30, 0  ;;  %v1606_v32 = vld [vmem:[%s2335_s5] ss:$0 sm:$0xff]  ;;  %v1608_v45 = vld [vmem:[%s2335_s5 + $0x1] ss:$0 sm:$0xff] }
  0x11   :  { %s1579_s1 = sshll.u32 %s1975_s29, 4  ;;  %s1580_s1 = int_to_ptr.vmem [resolvable:$true] %s1579_s1 }
  0x12   :  { %s1949_s12 = scalar_lea.vmem %s1580_s1, 256  ;;  %p1954_p1 = scmp.lt.s32.totalorder %s1580_s1, %s1580_s1 }
  0x13   :  { %p1950_p0 = scmp.ne.s32.totalorder %s1580_s1, %s1949_s12  ;;  %p1955_p2 = scmp.lt.s32.totalorder %s1949_s12, %s1949_s12 }
  0x15   :  { %p1956_p3 = por %p1955_p2, %p1954_p1 }
  0x17   :  { %p1957_p4 = pnand %p1956_p3, %p1950_p0 }
  0xdc   :  { %v94_v8 = vpop.f32.mrb[0].mxu0 }
  0xdd   :  { %v159_v9 = vpack.c.bf16 %v94_v8, %v94_v8  ;;  %v1750_v10 = vpop.f32.mrb[1].mxu0 }
  0xde   :  { %v97_v11 = vpop.f32.mrb[2].mxu0  ;;  %v152_v12 = vpop.f32.mrb[0].mxu1 }
  0xdf   :  { %v169_v13 = vsel %vm167_vm2, %v159_v9, 0  ;;  %v160_v14 = vpack.c.bf16 %v97_v11, %v97_v11  ;;  %v1751_v15 = vpop.f32.mrb[3].mxu0  ;;  %v161_v16 = vpack.c.bf16 %v152_v12, %v152_v12  ;;  %v1758_v17 = vpop.f32.mrb[1].mxu1 }
  0xe0   :  { %1761 = vmatpush3.bf16.msra.mxu0 %v169_v13  ;;  %v155_v18 = vpop.f32.mrb[2].mxu1  ;;  %v1937_v15 = vld [vmem:[%s2334_s4] sm:$0xff]   ;;  %v1939_v17 = vld [vmem:[%s2334_s4 + $0x10] sm:$0xff]  }
  0xe1   :  { %v215_v20 = vsel %vm167_vm2, %v160_v14, 0  ;;  %v261_v21 = vsel %vm167_vm2, %v161_v16, 0  ;;  %v162_v22 = vpack.c.bf16 %v155_v18, %v155_v18  ;;  %v1759_v23 = vpop.f32.mrb[3].mxu1  ;;  %1772 = vmatprep.subr.bf16.mxu0 %v1973_v1  ;;  %v1938_v16 = vld [vmem:[%s2334_s4 + $0x8] sm:$0xff]   ;;  %v1940_v18 = vld [vmem:[%s2334_s4 + $0x18] sm:$0xff]  }
  0xe2   :  { %1767 = vmatpush3.bf16.msra.mxu1 %v215_v20  ;;  %v1616_v20 = vld [vmem:[%s2336_s6] ss:$0 sm:$0xff] }
  0xe3   :  { %v307_v25 = vsel %vm167_vm2, %v162_v22, 0  ;;  %1763 = vmatmul.mubr.msk.bf16.vlgmr.msra.gmra.mrb[4].mxu0 %vm163_vm3, %v2072_v19  ;;  %1778 = vmatprep.subr.bf16.mxu1 %v1973_v1 }
  0xe4   :  { %1773 = vmatpush3.bf16.msra.mxu0 %v261_v21  ;;  %1774 = vmatprep.mubr.msk.bf16.mxu0 %vm1974_vm0, %v1973_v1 }
  0xe5   :  { %1769 = vmatmul.mubr.msk.bf16.vlgmr.msra.gmra.mrb[4].mxu1 %vm163_vm3, %v2080_v24  ;;  %1784 = vmatprep.subr.bf16.mxu0 %v1973_v1 }
  0xe6   :  { %1779 = vmatpush3.bf16.msra.mxu1 %v307_v25  ;;  %1780 = vmatprep.mubr.msk.bf16.mxu1 %vm1974_vm0, %v1973_v1 }
  0xe7   :  { %1790 = vmatprep.subr.bf16.mxu1 %v1973_v1 }
  0xeb   :  { %1775 = vmatmul.mubr.msk.bf16.vlgmr.msra.gmra.mrb[8].mxu0 %vm163_vm3, %v2097_v26 }
  0xec   :  { %1786 = vmatprep.mubr.msk.bf16.mxu0 %vm1974_vm0, %v1973_v1  ;;  %1785 = vmatpush3.bf16.msra.mxu0 %v378_v29 }
  0xed   :  { %1781 = vmatmul.mubr.msk.bf16.vlgmr.msra.gmra.mrb[8].mxu1 %vm163_vm3, %v2102_v27  ;;  %1796 = vmatprep.subr.bf16.mxu0 %v1973_v1 }
  0xee   :  { %1792 = vmatprep.mubr.msk.bf16.mxu1 %vm1974_vm0, %v1973_v1  ;;  %1791 = vmatpush3.bf16.msra.mxu1 %v428_v31 }
  0xef   :  { %1802 = vmatprep.subr.bf16.mxu1 %v1973_v1 }
 0x1b6   :  { %v205_v33 = vpop.f32.mrb[4].mxu0 }
 0x1b7   :  { %v356_v34 = vadd.f32 %v1606_v32, %v205_v33  ;;  %v1764_v35 = vpop.f32.mrb[5].mxu0 }
 0x1b8   :  { %v208_v36 = vpop.f32.mrb[6].mxu0  ;;  %v251_v37 = vpop.f32.mrb[4].mxu1 }
 0x1b9   :  { %v358_v38 = vmax.f32 %v356_v34, 0.0  ;;  %v357_v39 = vadd.f32 %v1606_v32, %v251_v37  ;;  %v1765_v40 = vpop.f32.mrb[7].mxu0  ;;  %v1770_v41 = vpop.f32.mrb[5].mxu1  ;;  %v1618_v36 = vld [vmem:[%s2336_s6 + $0x1] ss:$0 sm:$0xff] }
 0x1ba   :  { %v254_v42 = vpop.f32.mrb[6].mxu1 }
 0x1bb   :  { %v359_v43 = vmax.f32 %v357_v39, 0.0  ;;  %v1771_v44 = vpop.f32.mrb[7].mxu1 }
 0x1bd   :  { %v373_v46 = vpack.c.bf16 %v359_v43, %v358_v38 }
 0x1be   :  { %v297_v47 = vpop.f32.mrb[8].mxu0 }
 0x1bf   :  { %v368_v48 = vadd.f32 %v1608_v45, %v297_v47  ;;  %v1776_v49 = vpop.f32.mrb[9].mxu0  ;;  %1787 = vmatmul.mubr.msk.bf16.vlgmr.msra.gmra.mrb[12].mxu0 %vm163_vm3, %v373_v46 }
 0x1c0   :  { %v300_v50 = vpop.f32.mrb[10].mxu0  ;;  %v343_v51 = vpop.f32.mrb[8].mxu1  ;;  %1798 = vmatprep.mubr.msk.bf16.mxu0 %vm1974_vm0, %v1973_v1 }
 0x1c1   :  { %v370_v52 = vmax.f32 %v368_v48, 0.0  ;;  %v369_v53 = vadd.f32 %v1608_v45, %v343_v51  ;;  %v1777_v54 = vpop.f32.mrb[11].mxu0  ;;  %v1782_v55 = vpop.f32.mrb[9].mxu1  ;;  %v1941_v51 = vld [vmem:[%s2332_s2 + $0x20] sm:$0xff]  }
 0x1c2   :  { %v346_v56 = vpop.f32.mrb[10].mxu1  ;;  %v1944_v54 = vld [vmem:[%s2332_s2 + $0x38] sm:$0xff]  }
 0x1c3   :  { %v371_v57 = vmax.f32 %v369_v53, 0.0  ;;  %v1783_v58 = vpop.f32.mrb[11].mxu1  ;;  %v1943_v53 = vld [vmem:[%s2332_s2 + $0x28] sm:$0xff]  }
 0x1c5   :  { %v423_v59 = vpack.c.bf16 %v371_v57, %v370_v52  ;;  %v1942_v52 = vld [vmem:[%s2332_s2 + $0x30] sm:$0xff]  }
 0x1c7   :  { %1793 = vmatmul.mubr.msk.bf16.vlgmr.msra.gmra.mrb[12].mxu1 %vm163_vm3, %v423_v59 }
 0x1c8   :  { %1804 = vmatprep.mubr.msk.bf16.mxu1 %vm1974_vm0, %v1973_v1 }
 0x292   :  { %v414_v60 = vpop.f32.mrb[12].mxu0 }
 0x293   :  { %v471_v61 = vpack.c.bf16 %v414_v60, %v414_v60  ;;  %v1788_v62 = vpop.f32.mrb[13].mxu0  ;;  %v1629_v60 = vld [vmem:[%s2337_s7] ss:$0 sm:$0xff] }
 0x294   :  { %v417_v63 = vpop.f32.mrb[14].mxu0 }
 0x295   :  { %v476_v0 = vsel %vm167_vm2, %v471_v61, 0  ;;  %v472_v2 = vpack.c.bf16 %v417_v63, %v417_v63  ;;  %v1789_v3 = vpop.f32.mrb[15].mxu0 }
 0x296   :  { %1797 = vmatpush3.bf16.msra.mxu0 %v476_v0 }
 0x297   :  { %v519_v6 = vsel %vm167_vm2, %v472_v2, 0  ;;  %1808 = vmatprep.subr.bf16.mxu0 %v1973_v1 }
 0x298   :  { %1803 = vmatpush3.bf16.msra.mxu1 %v519_v6 }
 0x299   :  { %1799 = vmatmul.mubr.msk.bf16.vlgmr.msra.gmra.mrb[16].mxu0 %vm163_vm3, %v2072_v19  ;;  %1814 = vmatprep.subr.bf16.mxu1 %v1973_v1 }
 0x29a   :  { %v464_v7 = vpop.f32.mrb[12].mxu1  ;;  %1810 = vmatprep.mubr.msk.bf16.mxu0 %vm1974_vm0, %v1973_v1 }
 0x29b   :  { %v473_v8 = vpack.c.bf16 %v464_v7, %v464_v7  ;;  %v1794_v9 = vpop.f32.mrb[13].mxu1  ;;  %1805 = vmatmul.mubr.msk.bf16.vlgmr.msra.gmra.mrb[16].mxu1 %vm163_vm3, %v2080_v24 }
 0x29c   :  { %v467_v10 = vpop.f32.mrb[14].mxu1  ;;  %1816 = vmatprep.mubr.msk.bf16.mxu1 %vm1974_vm0, %v1973_v1 }
 0x29d   :  { %v562_v11 = vsel %vm167_vm2, %v473_v8, 0  ;;  %v474_v12 = vpack.c.bf16 %v467_v10, %v467_v10  ;;  %v1795_v13 = vpop.f32.mrb[15].mxu1 }
 0x29e   :  { %1809 = vmatpush3.bf16.msra.mxu0 %v562_v11 }
 0x29f   :  { %v605_v14 = vsel %vm167_vm2, %v474_v12, 0  ;;  %1820 = vmatprep.subr.bf16.mxu0 %v1973_v1 }
 0x2a0   :  { %1815 = vmatpush3.bf16.msra.mxu1 %v605_v14 }
 0x2a1   :  { %1811 = vmatmul.mubr.msk.bf16.vlgmr.msra.gmra.mrb[20].mxu0 %vm163_vm3, %v2097_v26  ;;  %1828 = vmatprep.subr.bf16.mxu1 %v1973_v1 }
 0x2a2   :  { %1824 = vmatprep.mubr.msk.bf16.mxu0 %vm1974_vm0, %v1973_v1  ;;  %1821 = vmatpush3.bf16.msra.mxu0 %v1937_v15 }
 0x2a3   :  { %1817 = vmatmul.mubr.msk.bf16.vlgmr.msra.gmra.mrb[20].mxu1 %vm163_vm3, %v2102_v27  ;;  %1822 = vmatprep.subr.bf16.mxu0 %v1973_v1 }
 0x2a4   :  { %1832 = vmatprep.mubr.msk.bf16.mxu1 %vm1974_vm0, %v1973_v1  ;;  %1829 = vmatpush3.bf16.msra.mxu1 %v1939_v17 }
 0x2a5   :  { %1830 = vmatprep.subr.bf16.mxu1 %v1973_v1 }
 0x2a6   :  { %1823 = vmatpush3.bf16.msra.mxu0 %v1938_v16 }
 0x2a7   :  { %1836 = vmatprep.subr.bf16.mxu0 %v1973_v1 }
 0x2a8   :  { %1831 = vmatpush3.bf16.msra.mxu1 %v1940_v18 }
 0x2a9   :  { %1844 = vmatprep.subr.bf16.mxu1 %v1973_v1 }
 0x36c   :  { %v512_v21 = vpop.f32.mrb[16].mxu0 }
 0x36d   :  { %v654_v22 = vadd.f32 %v1616_v20, %v512_v21  ;;  %v1800_v23 = vpop.f32.mrb[17].mxu0 }
 0x36e   :  { %v515_v25 = vpop.f32.mrb[18].mxu0  ;;  %v555_v28 = vpop.f32.mrb[16].mxu1 }
 0x36f   :  { %v656_v29 = vmax.f32 %v654_v22, 0.0  ;;  %v655_v30 = vadd.f32 %v1616_v20, %v555_v28  ;;  %v1801_v31 = vpop.f32.mrb[19].mxu0  ;;  %v1806_v32 = vpop.f32.mrb[17].mxu1 }
 0x370   :  { %v558_v33 = vpop.f32.mrb[18].mxu1  ;;  %v1654_v32 = vld [vmem:[%s2333_s3 + $0xc] sm:$0xf] }
 0x371   :  { %v657_v34 = vmax.f32 %v655_v30, 0.0  ;;  %v1807_v35 = vpop.f32.mrb[19].mxu1  ;;  %v1652_v30 = vld [vmem:[%s2333_s3 + $0x8] sm:$0xf]  ;;  %v1183_v33 = vsel %vm167_vm2, %v1654_v32, 0 }
 0x372   :  { %v1133_v31 = vsel %vm167_vm2, %v1652_v30, 0 }
 0x373   :  { %v674_v37 = vpack.c.bf16 %v657_v34, %v656_v29  ;;  %v1649_v34 = vld [vmem:[%s2335_s5 + $0x2] ss:$0 sm:$0xff] }
 0x374   :  { %v598_v38 = vpop.f32.mrb[20].mxu0 }
 0x375   :  { %v666_v39 = vadd.f32 %v1618_v36, %v598_v38  ;;  %v1812_v40 = vpop.f32.mrb[21].mxu0  ;;  %1825 = vmatmul.mubr.msk.bf16.vlgmr.msra.gmra.mrb[24].mxu0 %vm56_vm1, %v674_v37 }
 0x376   :  { %v601_v41 = vpop.f32.mrb[22].mxu0  ;;  %v641_v42 = vpop.f32.mrb[20].mxu1  ;;  %1840 = vmatprep.mubr.msk.bf16.mxu0 %vm1974_vm0, %v1973_v1  ;;  %1837 = vmatpush3.bf16.msra.mxu0 %v1941_v51 }
 0x377   :  { %v668_v43 = vmax.f32 %v666_v39, 0.0  ;;  %v667_v44 = vadd.f32 %v1618_v36, %v641_v42  ;;  %v1813_v45 = vpop.f32.mrb[23].mxu0  ;;  %v1818_v46 = vpop.f32.mrb[21].mxu1  ;;  %1838 = vmatprep.subr.bf16.mxu0 %v1973_v1 }
 0x378   :  { %v644_v47 = vpop.f32.mrb[22].mxu1 }
 0x379   :  { %v669_v48 = vmax.f32 %v667_v44, 0.0  ;;  %v1819_v49 = vpop.f32.mrb[23].mxu1  ;;  %v1651_v47 = vld [vmem:[%s2335_s5 + $0x3] ss:$0 sm:$0xff] }
 0x37a   :  { %1839 = vmatpush3.bf16.msra.mxu0 %v1943_v53 }
 0x37b   :  { %v736_v50 = vpack.c.bf16 %v669_v48, %v668_v43  ;;  %1852 = vmatprep.subr.bf16.mxu0 %v1973_v1 }
 0x37d   :  { %1833 = vmatmul.mubr.msk.bf16.vlgmr.msra.gmra.mrb[24].mxu1 %vm56_vm1, %v736_v50 }
 0x37e   :  { %1848 = vmatprep.mubr.msk.bf16.mxu1 %vm1974_vm0, %v1973_v1  ;;  %1845 = vmatpush3.bf16.msra.mxu1 %v1942_v52 }
 0x37f   :  { %1846 = vmatprep.subr.bf16.mxu1 %v1973_v1 }
 0x382   :  { %1847 = vmatpush3.bf16.msra.mxu1 %v1944_v54 }
 0x383   :  { %1858 = vmatprep.subr.bf16.mxu1 %v1973_v1 }
 0x448   :  { %v724_v55 = vpop.f32.mrb[24].mxu0 }
 0x449   :  { %v1826_v56 = vpop.f32.mrb[25].mxu0 }
 0x44a   :  { %v727_v57 = vpop.f32.mrb[26].mxu0 }
 0x44b   :  { %v1827_v58 = vpop.f32.mrb[27].mxu0 }
 0x450   :  { %v786_v59 = vpop.f32.mrb[24].mxu1 }
 0x451   :  { %v793_v61 = vadd.f32 %v786_v59, %v724_v55  ;;  %v1834_v62 = vpop.f32.mrb[25].mxu1 }
 0x452   :  { %v789_v63 = vpop.f32.mrb[26].mxu1 }
 0x453   :  { %v802_v0 = vadd.f32 %v1629_v60, %v793_v61  ;;  %v794_v2 = vadd.f32 %v789_v63, %v727_v57  ;;  %v1835_v3 = vpop.f32.mrb[27].mxu1 }
 0x455   :  { %v803_v6 = vadd.f32 %v1629_v60, %v794_v2  ;;  %v804_v7 = vmax.f32 %v802_v0, 0.0 }
 0x457   :  { %v805_v8 = vmax.f32 %v803_v6, 0.0 }
 0x459   :  { %v811_v9 = vpack.c.bf16 %v805_v8, %v804_v7 }
 0x45b   :  { %1841 = vmatmul.mubr.msk.bf16.vlgmr.msra.gmra.mrb[28].mxu0 %vm56_vm1, %v811_v9  ;;  %1849 = vmatmul.mubr.msk.bf16.vlgmr.msra.gmra.mrb[28].mxu1 %vm56_vm1, %v811_v9 }
 0x45c   :  { %1854 = vmatprep.mubr.msk.bf16.mxu0 %vm1974_vm0, %v1973_v1  ;;  %1860 = vmatprep.mubr.msk.bf16.mxu1 %vm1974_vm0, %v1973_v1 }
 0x52e   :  { %v861_v10 = vpop.f32.mrb[28].mxu0  ;;  %v919_v11 = vpop.f32.mrb[28].mxu1 }
 0x52f   :  { %v926_v12 = vpack.c.bf16 %v861_v10, %v861_v10  ;;  %v1842_v13 = vpop.f32.mrb[29].mxu0  ;;  %v1850_v14 = vpop.f32.mrb[29].mxu1  ;;  %v928_v18 = vpack.c.bf16 %v919_v11, %v919_v11 }
 0x530   :  { %v864_v15 = vpop.f32.mrb[30].mxu0  ;;  %v922_v16 = vpop.f32.mrb[30].mxu1 }
 0x531   :  { %v931_v17 = vsel %vm167_vm2, %v926_v12, 0  ;;  %v927_v20 = vpack.c.bf16 %v864_v15, %v864_v15  ;;  %v1843_v21 = vpop.f32.mrb[31].mxu0  ;;  %v1851_v22 = vpop.f32.mrb[31].mxu1  ;;  %v929_v25 = vpack.c.bf16 %v922_v16, %v922_v16  ;;  %v1017_v28 = vsel %vm167_vm2, %v928_v18, 0  ;;  %v1947_v16 = vld [vmem:[%s2334_s4 + $0x30] sm:$0xff]  }
 0x532   :  { %1853 = vmatpush3.bf16.msra.mxu0 %v931_v17  ;;  %v1661_v17 = vld [vmem:[%s2336_s6 + $0x2] ss:$0 sm:$0xff] }
 0x533   :  { %v974_v23 = vsel %vm167_vm2, %v927_v20, 0  ;;  %1864 = vmatprep.subr.bf16.mxu0 %v1973_v1  ;;  %v1060_v29 = vsel %vm167_vm2, %v929_v25, 0 }
 0x534   :  { %1859 = vmatpush3.bf16.msra.mxu1 %v974_v23 }
 0x535   :  { %1855 = vmatmul.mubr.msk.bf16.vlgmr.msra.gmra.mrb[32].mxu0 %vm163_vm3, %v2072_v19  ;;  %1870 = vmatprep.subr.bf16.mxu1 %v1973_v1 }
 0x536   :  { %1865 = vmatpush3.bf16.msra.mxu0 %v1017_v28  ;;  %1866 = vmatprep.mubr.msk.bf16.mxu0 %vm1974_vm0, %v1973_v1 }
 0x537   :  { %1861 = vmatmul.mubr.msk.bf16.vlgmr.msra.gmra.mrb[32].mxu1 %vm163_vm3, %v2080_v24  ;;  %1876 = vmatprep.subr.bf16.mxu0 %v1973_v1 }
 0x538   :  { %1871 = vmatpush3.bf16.msra.mxu1 %v1060_v29  ;;  %1872 = vmatprep.mubr.msk.bf16.mxu1 %vm1974_vm0, %v1973_v1 }
 0x539   :  { %1882 = vmatprep.subr.bf16.mxu1 %v1973_v1 }
 0x53d   :  { %1867 = vmatmul.mubr.msk.bf16.vlgmr.msra.gmra.mrb[36].mxu0 %vm163_vm3, %v2097_v26 }
 0x53e   :  { %1878 = vmatprep.mubr.msk.bf16.mxu0 %vm1974_vm0, %v1973_v1  ;;  %1877 = vmatpush3.bf16.msra.mxu0 %v1133_v31 }
 0x53f   :  { %1873 = vmatmul.mubr.msk.bf16.vlgmr.msra.gmra.mrb[36].mxu1 %vm163_vm3, %v2102_v27  ;;  %1888 = vmatprep.subr.bf16.mxu0 %v1973_v1 }
 0x540   :  { %1884 = vmatprep.mubr.msk.bf16.mxu1 %vm1974_vm0, %v1973_v1  ;;  %1883 = vmatpush3.bf16.msra.mxu1 %v1183_v33  ;;  %v1663_v33 = vld [vmem:[%s2336_s6 + $0x3] ss:$0 sm:$0xff] }
 0x541   :  { %1894 = vmatprep.subr.bf16.mxu1 %v1973_v1 }
 0x608   :  { %v967_v35 = vpop.f32.mrb[32].mxu0 }
 0x609   :  { %v1110_v36 = vadd.f32 %v1649_v34, %v967_v35  ;;  %v1856_v37 = vpop.f32.mrb[33].mxu0 }
 0x60a   :  { %v970_v38 = vpop.f32.mrb[34].mxu0  ;;  %v1010_v39 = vpop.f32.mrb[32].mxu1 }
 0x60b   :  { %v1112_v40 = vmax.f32 %v1110_v36, 0.0  ;;  %v1111_v41 = vadd.f32 %v1649_v34, %v1010_v39  ;;  %v1857_v42 = vpop.f32.mrb[35].mxu0  ;;  %v1862_v43 = vpop.f32.mrb[33].mxu1 }
 0x60c   :  { %v1013_v44 = vpop.f32.mrb[34].mxu1 }
 0x60d   :  { %v1113_v45 = vmax.f32 %v1111_v41, 0.0  ;;  %v1863_v46 = vpop.f32.mrb[35].mxu1 }
 0x60f   :  { %v1128_v48 = vpack.c.bf16 %v1113_v45, %v1112_v40 }
 0x610   :  { %v1053_v49 = vpop.f32.mrb[36].mxu0 }
 0x611   :  { %v1122_v50 = vadd.f32 %v1651_v47, %v1053_v49  ;;  %v1868_v51 = vpop.f32.mrb[37].mxu0  ;;  %1879 = vmatmul.mubr.msk.bf16.vlgmr.msra.gmra.mrb[40].mxu0 %vm163_vm3, %v1128_v48 }
 0x612   :  { %v1056_v52 = vpop.f32.mrb[38].mxu0  ;;  %v1096_v53 = vpop.f32.mrb[36].mxu1  ;;  %1890 = vmatprep.mubr.msk.bf16.mxu0 %vm1974_vm0, %v1973_v1 }
 0x613   :  { %v1124_v54 = vmax.f32 %v1122_v50, 0.0  ;;  %v1123_v55 = vadd.f32 %v1651_v47, %v1096_v53  ;;  %v1869_v56 = vpop.f32.mrb[39].mxu0  ;;  %v1874_v57 = vpop.f32.mrb[37].mxu1  ;;  %v1679_v53 = vld [vmem:[%s2337_s7 + $0x1] ss:$0 sm:$0xff] }
 0x614   :  { %v1099_v58 = vpop.f32.mrb[38].mxu1 }
 0x615   :  { %v1125_v59 = vmax.f32 %v1123_v55, 0.0  ;;  %v1875_v60 = vpop.f32.mrb[39].mxu1 }
 0x617   :  { %v1178_v61 = vpack.c.bf16 %v1125_v59, %v1124_v54 }
 0x619   :  { %1885 = vmatmul.mubr.msk.bf16.vlgmr.msra.gmra.mrb[40].mxu1 %vm163_vm3, %v1178_v61 }
 0x61a   :  { %1896 = vmatprep.mubr.msk.bf16.mxu1 %vm1974_vm0, %v1973_v1 }
 0x6e4   :  { %v1169_v62 = vpop.f32.mrb[40].mxu0 }
 0x6e5   :  { %v1226_v63 = vpack.c.bf16 %v1169_v62, %v1169_v62  ;;  %v1880_v0 = vpop.f32.mrb[41].mxu0 }
 0x6e6   :  { %v1172_v2 = vpop.f32.mrb[42].mxu0 }
 0x6e7   :  { %v1231_v3 = vsel %vm167_vm2, %v1226_v63, 0  ;;  %v1227_v6 = vpack.c.bf16 %v1172_v2, %v1172_v2  ;;  %v1881_v7 = vpop.f32.mrb[43].mxu0 }
 0x6e8   :  { %1889 = vmatpush3.bf16.msra.mxu0 %v1231_v3 }
 0x6e9   :  { %v1274_v8 = vsel %vm167_vm2, %v1227_v6, 0  ;;  %1900 = vmatprep.subr.bf16.mxu0 %v1973_v1 }
 0x6ea   :  { %1895 = vmatpush3.bf16.msra.mxu1 %v1274_v8 }
 0x6eb   :  { %1891 = vmatmul.mubr.msk.bf16.vlgmr.msra.gmra.mrb[44].mxu0 %vm163_vm3, %v2072_v19  ;;  %1906 = vmatprep.subr.bf16.mxu1 %v1973_v1 }
 0x6ec   :  { %v1219_v9 = vpop.f32.mrb[40].mxu1  ;;  %1902 = vmatprep.mubr.msk.bf16.mxu0 %vm1974_vm0, %v1973_v1 }
 0x6ed   :  { %v1228_v10 = vpack.c.bf16 %v1219_v9, %v1219_v9  ;;  %v1886_v11 = vpop.f32.mrb[41].mxu1  ;;  %1897 = vmatmul.mubr.msk.bf16.vlgmr.msra.gmra.mrb[44].mxu1 %vm163_vm3, %v2080_v24  ;;  %v1945_v24 = vld [vmem:[%s2334_s4 + $0x20] sm:$0xff]  }
 0x6ee   :  { %v1222_v12 = vpop.f32.mrb[42].mxu1  ;;  %1908 = vmatprep.mubr.msk.bf16.mxu1 %vm1974_vm0, %v1973_v1 }
 0x6ef   :  { %v1317_v13 = vsel %vm167_vm2, %v1228_v10, 0  ;;  %v1229_v14 = vpack.c.bf16 %v1222_v12, %v1222_v12  ;;  %v1887_v15 = vpop.f32.mrb[43].mxu1 }
 0x6f0   :  { %1901 = vmatpush3.bf16.msra.mxu0 %v1317_v13 }
 0x6f1   :  { %v1360_v19 = vsel %vm167_vm2, %v1229_v14, 0  ;;  %1912 = vmatprep.subr.bf16.mxu0 %v1973_v1 }
 0x6f2   :  { %1907 = vmatpush3.bf16.msra.mxu1 %v1360_v19 }
 0x6f3   :  { %1903 = vmatmul.mubr.msk.bf16.vlgmr.msra.gmra.mrb[48].mxu0 %vm163_vm3, %v2097_v26  ;;  %1920 = vmatprep.subr.bf16.mxu1 %v1973_v1  ;;  %v1946_v26 = vld [vmem:[%s2334_s4 + $0x28] sm:$0xff]  }
 0x6f4   :  { %1916 = vmatprep.mubr.msk.bf16.mxu0 %vm1974_vm0, %v1973_v1  ;;  %1913 = vmatpush3.bf16.msra.mxu0 %v1945_v24 }
 0x6f5   :  { %1909 = vmatmul.mubr.msk.bf16.vlgmr.msra.gmra.mrb[48].mxu1 %vm163_vm3, %v2102_v27  ;;  %1914 = vmatprep.subr.bf16.mxu0 %v1973_v1  ;;  %v1948_v27 = vld [vmem:[%s2334_s4 + $0x38] sm:$0xff]  }
 0x6f6   :  { %1924 = vmatprep.mubr.msk.bf16.mxu1 %vm1974_vm0, %v1973_v1  ;;  %1921 = vmatpush3.bf16.msra.mxu1 %v1947_v16 }
 0x6f7   :  { %1922 = vmatprep.subr.bf16.mxu1 %v1973_v1 }
 0x6f8   :  { %1915 = vmatpush3.bf16.msra.mxu0 %v1946_v26 }
 0x6fa   :  { %1923 = vmatpush3.bf16.msra.mxu1 %v1948_v27 }
 0x7be   :  { %v1267_v18 = vpop.f32.mrb[44].mxu0 }
 0x7bf   :  { %v1410_v20 = vadd.f32 %v1661_v17, %v1267_v18  ;;  %v1892_v21 = vpop.f32.mrb[45].mxu0 }
 0x7c0   :  { %v1310_v22 = vpop.f32.mrb[44].mxu1  ;;  %v1270_v23 = vpop.f32.mrb[46].mxu0 }
 0x7c1   :  { %v1412_v25 = vmax.f32 %v1410_v20, 0.0  ;;  %v1411_v28 = vadd.f32 %v1661_v17, %v1310_v22  ;;  %v1898_v29 = vpop.f32.mrb[45].mxu1  ;;  %v1893_v30 = vpop.f32.mrb[47].mxu0 }
 0x7c2   :  { %v1313_v31 = vpop.f32.mrb[46].mxu1 }
 0x7c3   :  { %v1413_v1 = vmax.f32 %v1411_v28, 0.0  ;;  %v1899_v32 = vpop.f32.mrb[47].mxu1 }
 0x7c5   :  { %v1431_v34 = vpack.c.bf16 %v1413_v1, %v1412_v25 }
 0x7c6   :  { %v1353_v35 = vpop.f32.mrb[48].mxu0 }
 0x7c7   :  { %v1422_v36 = vadd.f32 %v1663_v33, %v1353_v35  ;;  %1917 = vmatmul.mubr.msk.bf16.vlgmr.msra.gmra.mrb[52].mxu0 %vm56_vm1, %v1431_v34  ;;  %v1904_v37 = vpop.f32.mrb[49].mxu0 }
 0x7c8   :  { %v1396_v38 = vpop.f32.mrb[48].mxu1  ;;  %v1356_v39 = vpop.f32.mrb[50].mxu0 }
 0x7c9   :  { %v1424_v40 = vmax.f32 %v1422_v36, 0.0  ;;  %v1423_v41 = vadd.f32 %v1663_v33, %v1396_v38  ;;  %v1910_v42 = vpop.f32.mrb[49].mxu1  ;;  %v1905_v43 = vpop.f32.mrb[51].mxu0 }
 0x7ca   :  { %v1399_v44 = vpop.f32.mrb[50].mxu1 }
 0x7cb   :  { %v1425_v45 = vmax.f32 %v1423_v41, 0.0  ;;  %v1911_v46 = vpop.f32.mrb[51].mxu1 }
 0x7cd   :  { %v1493_v47 = vpack.c.bf16 %v1425_v45, %v1424_v40 }
 0x7cf   :  { %1925 = vmatmul.mubr.msk.bf16.vlgmr.msra.gmra.mrb[52].mxu1 %vm56_vm1, %v1493_v47 }
 0x89a   :  { %v1481_v48 = vpop.f32.mrb[52].mxu0 }
 0x89b   :  { %v1918_v49 = vpop.f32.mrb[53].mxu0 }
 0x89c   :  { %v1484_v50 = vpop.f32.mrb[54].mxu0 }
 0x89d   :  { %v1919_v51 = vpop.f32.mrb[55].mxu0 }
 0x8a2   :  { %v1543_v52 = vpop.f32.mrb[52].mxu1 }
 0x8a3   :  { %v1550_v54 = vadd.f32 %v1543_v52, %v1481_v48  ;;  %v1926_v55 = vpop.f32.mrb[53].mxu1 }
 0x8a4   :  { %v1546_v56 = vpop.f32.mrb[54].mxu1 }
 0x8a5   :  { %v1560_v57 = vadd.f32 %v1679_v53, %v1550_v54  ;;  %v1551_v58 = vadd.f32 %v1546_v56, %v1484_v50  ;;  %v1927_v59 = vpop.f32.mrb[55].mxu1 }
 0x8a7   :  { %v1562_v60 = vmax.f32 %v1560_v57, 0.0  ;;  %v1561_v61 = vadd.f32 %v1679_v53, %v1551_v58 }
 0x8a9   :  { %1564 = vst.msk [vmem:[%s2338_s8] sm:$0xff] %vm56_vm1, %v1562_v60  ;;  %v1568_v62 = vadd.f32 %v1562_v60, %v2045_v4  ;;  %v1563_v63 = vmax.f32 %v1561_v61, 0.0 }
 0x8ab   :  { %1570 = vst.msk [vmem:[#allocation2] sm:$0xff] %vm56_vm1, %v1568_v62  ;;  %1565 = vst.msk [vmem:[%s2338_s8 + $0x8] sm:$0xff] %vm56_vm1, %v1563_v63  ;;  %v1569_v0 = vadd.f32 %v1563_v63, %v2050_v5 }
 0x8ad   :  { %1571 = vst.msk [vmem:[#allocation2 + $0x8] sm:$0xff] %vm56_vm1, %v1569_v0 }
 0x8ae   :  { %1960 = shalt.err (!%p1957_p4)
}
 0x8af   :  { %s1961_s14 = scalar_lea.hbm %s2339_s9, 256 }
 0x8b0   :  { %p1962_p5 = scmp.ne.s32.totalorder %s2339_s9, %s1961_s14  ;;  %p1965_p6 = scmp.lt.u32.totalorder %s1961_s14, %s2339_s9 }
 0x8b2   :  { %p1967_p7 = pnand %p1965_p6, %p1962_p5 }
 0x8b4   :  { %1970 = shalt.err (!%p1967_p7)
}
 0x8b5   :  { %s1976_s3 = smov 128   ;;  %s1977_s18 = smov 8  }
 0x8b6   :  { %1585 = dma.vmem_to_hbm [thread:$0]  %s1580_s1, 256, %s2339_s9, [#allocation3], %s1976_s3, %s1976_s3, %s1977_s18  }
 0x8b7   :  { %1971 = dma.done.wait [#allocation3], 256  }
 0x8b8   :  { %1972 = vsyncadd [#allocation3], 4294967040 }
 0x8b9   :  { %1591 = vsyncpa [#allocation3], 1 }

</bundles_post_ra>
